<compile_context>
chip_gen: v7x
topology: tpu7x:2x2x1
jax: 0.10.0
libtpu: 0.0.40
codegen_flags: <defaults>
</compile_context>

<pallas_src>
import functools

import jax
import jax.numpy as jnp
from jax.experimental import pallas as pl
from jax.experimental.pallas import tpu as pltpu

K = 5          # conv kernel size
PAD = 2        # conv padding
C1, C2, C3 = 64, 32, 1
EPS = 1e-5
HALO = 8       # left halo rounded up to sublane (8) alignment
RHALO = 8      # right halo rounded up (only PAD=2 of it is ever read)


def fcn_kernel(xp_ref,                              # (N, L+2*PAD, C0) padded NLC input (f32)
               w1_ref, b1_ref, g1_ref, be1_ref,     # (K*C0,C1) (1,C1) (1,C1) (1,C1)
               w2_ref, b2_ref, g2_ref, be2_ref,     # (K*C1,C2) (1,C2) (1,C2) (1,C2)
               w3_ref, b3_ref,                      # (K,C2) (1,1)
               out_ref,                             # (N, L) lane-dense output
               pad1_ref, pad2_ref,                  # VMEM scratch (padded activations)
               *, mxu_dtype=jnp.bfloat16):
    N, L = out_ref.shape
    C0 = xp_ref.shape[2]
    rows = N * L
    inv_rows = 1.0 / rows

    def bn_fold(h, gamma, beta):
        # Training-mode BatchNorm1d batch stats over the N*L rows, single pass, all f32.
        # (E[x^2]-mean^2 form; f32 accumulation, clamp guards tiny negative cancellation.)
        mean = jnp.sum(h, axis=0, keepdims=True) * inv_rows
        ex2 = jnp.sum(h * h, axis=0, keepdims=True) * inv_rows
        var = jnp.maximum(ex2 - mean * mean, 0.0)
        scale = gamma * jax.lax.rsqrt(var + EPS)
        shift = beta - mean * scale
        return scale, shift

    # --- layer 1: K accumulated MXU matmuls over shifted input views -> ReLU -> BN1 ---
    w1 = w1_ref[...].astype(mxu_dtype)                      # (K*C0, C1)
    h1 = jnp.zeros((rows, C1), jnp.float32)
    for k in range(K):
        xk = xp_ref[:, k:k + L, :].reshape(rows, C0).astype(mxu_dtype)
        h1 = h1 + jnp.dot(xk, w1[k * C0:(k + 1) * C0, :],
                          preferred_element_type=jnp.float32)
    h1 = jnp.maximum(h1 + b1_ref[...], 0.0)
    s1, t1 = bn_fold(h1, g1_ref[...], be1_ref[...])

    # padded h1 scratch: zero ONLY halo rows; interior write at 8-aligned offset.
    pad1_ref[:, :HALO, :] = jnp.zeros((N, HALO, C1), pad1_ref.dtype)
    pad1_ref[:, HALO + L:, :] = jnp.zeros((N, RHALO, C1), pad1_ref.dtype)
    pad1_ref[:, HALO:HALO + L, :] = (h1 * s1 + t1).reshape(N, L, C1).astype(pad1_ref.dtype)

    # --- layer 2: K accumulated MXU matmuls over shifted pad1 views -> ReLU -> BN2 ---
    # (no materialized im2col slab: each tap is a (rows, C1) x (C1, C2) matmul)
    w2 = w2_ref[...].astype(mxu_dtype)                      # (K*C1, C2)
    h2 = jnp.zeros((rows, C2), jnp.float32)
    for k in range(K):
        a = pad1_ref[:, HALO - PAD + k:HALO - PAD + k + L, :].reshape(rows, C1)
        h2 = h2 + jnp.dot(a.astype(mxu_dtype), w2[k * C1:(k + 1) * C1, :],
                          preferred_element_type=jnp.float32)
    h2 = jnp.maximum(h2 + b2_ref[...], 0.0)
    s2, t2 = bn_fold(h2, g2_ref[...], be2_ref[...])

    pad2_ref[:, :HALO, :] = jnp.zeros((N, HALO, C2), pad2_ref.dtype)
    pad2_ref[:, HALO + L:, :] = jnp.zeros((N, RHALO, C2), pad2_ref.dtype)
    pad2_ref[:, HALO:HALO + L, :] = (h2 * s2 + t2).reshape(N, L, C2).astype(pad2_ref.dtype)

    # --- layer 3 (Cout=1): VPU multiply-accumulate + channel (lane) reduce -----------
    # writes a lane-dense (N, L) output instead of a lane-width-1 (N, L, 1) slab.
    w3 = w3_ref[...]                                        # (K, C2) f32
    acc = jnp.zeros((N, L, C2), jnp.float32)
    for k in range(K):
        acc = acc + pad2_ref[:, HALO - PAD + k:HALO - PAD + k + L, :].astype(jnp.float32) \
                    * w3[k].reshape(1, 1, C2)
    out_ref[...] = jnp.maximum(jnp.sum(acc, axis=-1) + b3_ref[...], 0.0)


def init_params(key, feature_num):
    ks = jax.random.split(key, 6)
    p = {
        # PyTorch Conv1d weight layout: (out_channels, in_channels, K)
        "w1": 0.1 * jax.random.normal(ks[0], (C1, feature_num, K), jnp.float32),
        "b1": 0.1 * jax.random.normal(ks[1], (C1,), jnp.float32),
        "w2": 0.1 * jax.random.normal(ks[2], (C2, C1, K), jnp.float32),
        "b2": 0.1 * jax.random.normal(ks[3], (C2,), jnp.float32),
        "w3": 0.1 * jax.random.normal(ks[4], (C3, C2, K), jnp.float32),
        "b3": 0.1 * jax.random.normal(ks[5], (C3,), jnp.float32),
        # BatchNorm1d default affine init
        "g1": jnp.ones((C1,), jnp.float32), "be1": jnp.zeros((C1,), jnp.float32),
        "g2": jnp.ones((C2,), jnp.float32), "be2": jnp.zeros((C2,), jnp.float32),
    }
    return p


def fcn_forward(x, params, *, mxu_dtype=jnp.bfloat16):
    """x: (N, feature_num, L) float32 — PyTorch NCL convention. Returns (N, L).

    mxu_dtype=jnp.bfloat16 (default) targets the bf16-native MXU of v6e/v7x and
    stores the padded intermediates in bf16 (matmul accumulation / BN stats stay f32).
    Pass mxu_dtype=jnp.float32 for a bit-close match to the PyTorch f32 reference.
    """
    N, C0, L = x.shape

    # NCL -> NLC and zero-pad L by PAD on each side; im2col happens inside the kernel.
    xt = jnp.transpose(x, (0, 2, 1))
    xp = jnp.pad(xt, ((0, 0), (PAD, PAD), (0, 0)))          # (N, L+2*PAD, C0)

    def taps2d(w):   # (Cout, Cin, K) -> (K*Cin, Cout), matching the per-tap slicing order
        Cout, Cin, _ = w.shape
        return jnp.transpose(w, (2, 1, 0)).reshape(K * Cin, Cout)

    def row(v):      # (C,) -> (1, C)
        return v.reshape(1, -1)

    w3 = jnp.transpose(params["w3"], (2, 1, 0))[:, :, 0]    # (K, C2)

    args = (
        xp,
        taps2d(params["w1"]), row(params["b1"]), row(params["g1"]), row(params["be1"]),
        taps2d(params["w2"]), row(params["b2"]), row(params["g2"]), row(params["be2"]),
        w3, params["b3"].reshape(1, 1),
    )

    act_dtype = jnp.bfloat16 if mxu_dtype == jnp.bfloat16 else jnp.float32
    act_bytes = 2 if act_dtype == jnp.bfloat16 else 4
    Lh = HALO + L + RHALO

    # VMEM budget: scratch + resident inputs/outputs + f32 working activations, with headroom.
    scratch_bytes = N * Lh * (C1 + C2) * act_bytes
    io_bytes = 4 * (N * (L + 2 * PAD) * C0 + N * L
                    + K * (C0 * C1 + C1 * C2 + C2) + 4 * (C1 + C2) + 1)
    live_bytes = 4 * N * L * (C1 + C2) * 2
    vmem_limit = int(min(64 << 20, max(32 << 20,
                                       4 * (scratch_bytes + io_bytes + live_bytes))))

    flops = 2 * N * L * K * (C0 * C1 + C1 * C2 + C2 * C3)
    bytes_accessed = 4 * (N * (L + 2 * PAD) * C0 + N * L) \
        + 4 * K * (C0 * C1 + C1 * C2 + C2 * C3)

    vmem_spec = pl.BlockSpec(memory_space=pltpu.MemorySpace.VMEM)

    out = pl.pallas_call(
        functools.partial(fcn_kernel, mxu_dtype=mxu_dtype),
        out_shape=jax.ShapeDtypeStruct((N, L), jnp.float32),
        in_specs=[vmem_spec] * len(args),
        out_specs=vmem_spec,
        scratch_shapes=[
            pltpu.VMEM((N, Lh, C1), act_dtype),      # padded BN1(relu(conv1)) activations
            pltpu.VMEM((N, Lh, C2), act_dtype),      # padded BN2(relu(conv2)) activations
        ],
        compiler_params=pltpu.CompilerParams(vmem_limit_bytes=vmem_limit),
        cost_estimate=pl.CostEstimate(flops=flops, transcendentals=0,
                                      bytes_accessed=bytes_accessed),
    )(*args)
    return out  # already (N, L) == PyTorch out.squeeze(1)


def fcn_reference(x, params):
    """Pure-JAX reference matching the PyTorch forward (training-mode BN)."""
    def conv1d(h, w, b):
        y = jax.lax.conv_general_dilated(
            h, w, window_strides=(1,), padding=[(PAD, PAD)],
            dimension_numbers=("NCH", "OIH", "NCH"))
        return y + b[None, :, None]

    def bn(h, g, be):
        m = h.mean(axis=(0, 2), keepdims=True)
        v = ((h - m) ** 2).mean(axis=(0, 2), keepdims=True)
        return (h - m) / jnp.sqrt(v + EPS) * g[None, :, None] + be[None, :, None]

    h = jax.nn.relu(conv1d(x, params["w1"], params["b1"]))
    h = bn(h, params["g1"], params["be1"])
    h = jax.nn.relu(conv1d(h, params["w2"], params["b2"]))
    h = bn(h, params["g2"], params["be2"])
    h = jax.nn.relu(conv1d(h, params["w3"], params["b3"]))
    return h[:, 0, :]


if __name__ == "__main__":
    key = jax.random.PRNGKey(0)
    kx, kp = jax.random.split(key)

    N, feature_num, L = 2, 4, 16
    x = jax.random.normal(kx, (N, feature_num, L), jnp.float32)
    params = init_params(kp, feature_num)

    ref = jax.block_until_ready(fcn_reference(x, params))

    # default bf16 MXU path (v6e/v7x): looser tolerance vs the f32 reference.
    out_bf16 = jax.block_until_ready(fcn_forward(x, params))
    assert out_bf16.shape == (N, L), out_bf16.shape
    assert jnp.allclose(out_bf16, ref, rtol=1e-1, atol=1e-1), \
        f"bf16 max abs err {jnp.max(jnp.abs(out_bf16 - ref))}"

    # f32 MXU path: bit-close to the PyTorch-style reference.
    out_f32 = jax.block_until_ready(fcn_forward(x, params, mxu_dtype=jnp.float32))
    assert out_f32.shape == (N, L), out_f32.shape
    assert jnp.allclose(out_f32, ref, rtol=1e-2, atol=1e-3), \
        f"f32 max abs err {jnp.max(jnp.abs(out_f32 - ref))}"

    print("KERNEL_OK")
</pallas_src>

<mosaic_0001>
module attributes {stable_mosaic.version = 11 : i64} {
  func.func @fcn_kernel(%arg0: memref<2x20x4xf32, #tpu.memory_space<vmem>>, %arg1: memref<20x64xf32, #tpu.memory_space<vmem>>, %arg2: memref<1x64xf32, #tpu.memory_space<vmem>>, %arg3: memref<1x64xf32, #tpu.memory_space<vmem>>, %arg4: memref<1x64xf32, #tpu.memory_space<vmem>>, %arg5: memref<320x32xf32, #tpu.memory_space<vmem>>, %arg6: memref<1x32xf32, #tpu.memory_space<vmem>>, %arg7: memref<1x32xf32, #tpu.memory_space<vmem>>, %arg8: memref<1x32xf32, #tpu.memory_space<vmem>>, %arg9: memref<5x32xf32, #tpu.memory_space<vmem>>, %arg10: memref<1x1xf32, #tpu.memory_space<vmem>>, %arg11: memref<2x16xf32, #tpu.memory_space<vmem>>, %arg12: memref<2x32x64xbf16, #tpu.memory_space<vmem>>, %arg13: memref<2x32x32xbf16, #tpu.memory_space<vmem>>) attributes {dimension_semantics = [], scalar_prefetch = 0 : i64, scratch_operands = 2 : i64, tpu.core_type = #tpu.core_type<tc>} {
    %c0 = arith.constant 0 : index
    %c0_0 = arith.constant 0 : index
    %0 = vector.load %arg1[%c0, %c0_0] : memref<20x64xf32, #tpu.memory_space<vmem>>, vector<20x64xf32>
    %1 = arith.truncf %0 : vector<20x64xf32> to vector<20x64xbf16>
    %cst = arith.constant 0.000000e+00 : f32
    %2 = vector.broadcast %cst : f32 to vector<32x64xf32>
    %c0_1 = arith.constant 0 : index
    %c0_2 = arith.constant 0 : index
    %c0_3 = arith.constant 0 : index
    %3 = vector.load %arg0[%c0_1, %c0_2, %c0_3] : memref<2x20x4xf32, #tpu.memory_space<vmem>>, vector<2x16x4xf32>
    %4 = vector.shape_cast %3 : vector<2x16x4xf32> to vector<32x4xf32>
    %5 = arith.truncf %4 : vector<32x4xf32> to vector<32x4xbf16>
    %6 = vector.extract_strided_slice %1 {offsets = [0, 0], sizes = [4, 64], strides = [1, 1]} : vector<20x64xbf16> to vector<4x64xbf16>
    %cst_4 = arith.constant dense<0.000000e+00> : vector<32x64xf32>
    %7 = tpu.matmul %5, %6, %cst_4 {dimension_numbers = #tpu.dot_dimension_numbers<[1], [0], [0], [1], [0, 0, 1, 1], [], []>} : vector<32x4xbf16>, vector<4x64xbf16>, vector<32x64xf32> -> vector<32x64xf32>
    %8 = arith.addf %2, %7 : vector<32x64xf32>
    %c0_5 = arith.constant 0 : index
    %c1 = arith.constant 1 : index
    %c0_6 = arith.constant 0 : index
    %9 = vector.load %arg0[%c0_5, %c1, %c0_6] : memref<2x20x4xf32, #tpu.memory_space<vmem>>, vector<2x16x4xf32>
    %10 = vector.shape_cast %9 : vector<2x16x4xf32> to vector<32x4xf32>
    %11 = arith.truncf %10 : vector<32x4xf32> to vector<32x4xbf16>
    %12 = vector.extract_strided_slice %1 {offsets = [4, 0], sizes = [4, 64], strides = [1, 1]} : vector<20x64xbf16> to vector<4x64xbf16>
    %cst_7 = arith.constant dense<0.000000e+00> : vector<32x64xf32>
    %13 = tpu.matmul %11, %12, %cst_7 {dimension_numbers = #tpu.dot_dimension_numbers<[1], [0], [0], [1], [0, 0, 1, 1], [], []>} : vector<32x4xbf16>, vector<4x64xbf16>, vector<32x64xf32> -> vector<32x64xf32>
    %14 = arith.addf %8, %13 : vector<32x64xf32>
    %c0_8 = arith.constant 0 : index
    %c2 = arith.constant 2 : index
    %c0_9 = arith.constant 0 : index
    %15 = vector.load %arg0[%c0_8, %c2, %c0_9] : memref<2x20x4xf32, #tpu.memory_space<vmem>>, vector<2x16x4xf32>
    %16 = vector.shape_cast %15 : vector<2x16x4xf32> to vector<32x4xf32>
    %17 = arith.truncf %16 : vector<32x4xf32> to vector<32x4xbf16>
    %18 = vector.extract_strided_slice %1 {offsets = [8, 0], sizes = [4, 64], strides = [1, 1]} : vector<20x64xbf16> to vector<4x64xbf16>
    %cst_10 = arith.constant dense<0.000000e+00> : vector<32x64xf32>
    %19 = tpu.matmul %17, %18, %cst_10 {dimension_numbers = #tpu.dot_dimension_numbers<[1], [0], [0], [1], [0, 0, 1, 1], [], []>} : vector<32x4xbf16>, vector<4x64xbf16>, vector<32x64xf32> -> vector<32x64xf32>
    %20 = arith.addf %14, %19 : vector<32x64xf32>
    %c0_11 = arith.constant 0 : index
    %c3 = arith.constant 3 : index
    %c0_12 = arith.constant 0 : index
    %21 = vector.load %arg0[%c0_11, %c3, %c0_12] : memref<2x20x4xf32, #tpu.memory_space<vmem>>, vector<2x16x4xf32>
    %22 = vector.shape_cast %21 : vector<2x16x4xf32> to vector<32x4xf32>
    %23 = arith.truncf %22 : vector<32x4xf32> to vector<32x4xbf16>
    %24 = vector.extract_strided_slice %1 {offsets = [12, 0], sizes = [4, 64], strides = [1, 1]} : vector<20x64xbf16> to vector<4x64xbf16>
    %cst_13 = arith.constant dense<0.000000e+00> : vector<32x64xf32>
    %25 = tpu.matmul %23, %24, %cst_13 {dimension_numbers = #tpu.dot_dimension_numbers<[1], [0], [0], [1], [0, 0, 1, 1], [], []>} : vector<32x4xbf16>, vector<4x64xbf16>, vector<32x64xf32> -> vector<32x64xf32>
    %26 = arith.addf %20, %25 : vector<32x64xf32>
    %c0_14 = arith.constant 0 : index
    %c4 = arith.constant 4 : index
    %c0_15 = arith.constant 0 : index
    %27 = vector.load %arg0[%c0_14, %c4, %c0_15] : memref<2x20x4xf32, #tpu.memory_space<vmem>>, vector<2x16x4xf32>
    %28 = vector.shape_cast %27 : vector<2x16x4xf32> to vector<32x4xf32>
    %29 = arith.truncf %28 : vector<32x4xf32> to vector<32x4xbf16>
    %30 = vector.extract_strided_slice %1 {offsets = [16, 0], sizes = [4, 64], strides = [1, 1]} : vector<20x64xbf16> to vector<4x64xbf16>
    %cst_16 = arith.constant dense<0.000000e+00> : vector<32x64xf32>
    %31 = tpu.matmul %29, %30, %cst_16 {dimension_numbers = #tpu.dot_dimension_numbers<[1], [0], [0], [1], [0, 0, 1, 1], [], []>} : vector<32x4xbf16>, vector<4x64xbf16>, vector<32x64xf32> -> vector<32x64xf32>
    %32 = arith.addf %26, %31 : vector<32x64xf32>
    %c0_17 = arith.constant 0 : index
    %c0_18 = arith.constant 0 : index
    %33 = vector.load %arg2[%c0_17, %c0_18] : memref<1x64xf32, #tpu.memory_space<vmem>>, vector<1x64xf32>
    %34 = vector.broadcast %33 : vector<1x64xf32> to vector<32x64xf32>
    %35 = arith.addf %32, %34 : vector<32x64xf32>
    %cst_19 = arith.constant 0.000000e+00 : f32
    %36 = vector.broadcast %cst_19 : f32 to vector<32x64xf32>
    %37 = arith.maximumf %35, %36 : vector<32x64xf32>
    %c0_20 = arith.constant 0 : index
    %c0_21 = arith.constant 0 : index
    %38 = vector.load %arg3[%c0_20, %c0_21] : memref<1x64xf32, #tpu.memory_space<vmem>>, vector<1x64xf32>
    %c0_22 = arith.constant 0 : index
    %c0_23 = arith.constant 0 : index
    %39 = vector.load %arg4[%c0_22, %c0_23] : memref<1x64xf32, #tpu.memory_space<vmem>>, vector<1x64xf32>
    %cst_24 = arith.constant dense<0.000000e+00> : vector<64xf32>
    %40 = vector.multi_reduction <add>, %37, %cst_24 [0] : vector<32x64xf32> to vector<64xf32>
    %41 = vector.shape_cast %40 : vector<64xf32> to vector<1x64xf32>
    %cst_25 = arith.constant 3.125000e-02 : f32
    %42 = vector.broadcast %cst_25 : f32 to vector<1x64xf32>
    %43 = arith.mulf %41, %42 : vector<1x64xf32>
    %44 = arith.mulf %37, %37 : vector<32x64xf32>
    %cst_26 = arith.constant dense<0.000000e+00> : vector<64xf32>
    %45 = vector.multi_reduction <add>, %44, %cst_26 [0] : vector<32x64xf32> to vector<64xf32>
    %46 = vector.shape_cast %45 : vector<64xf32> to vector<1x64xf32>
    %cst_27 = arith.constant 3.125000e-02 : f32
    %47 = vector.broadcast %cst_27 : f32 to vector<1x64xf32>
    %48 = arith.mulf %46, %47 : vector<1x64xf32>
    %49 = arith.mulf %43, %43 : vector<1x64xf32>
    %50 = arith.subf %48, %49 : vector<1x64xf32>
    %cst_28 = arith.constant 0.000000e+00 : f32
    %51 = vector.broadcast %cst_28 : f32 to vector<1x64xf32>
    %52 = arith.maximumf %50, %51 : vector<1x64xf32>
    %cst_29 = arith.constant 9.99999974E-6 : f32
    %53 = vector.broadcast %cst_29 : f32 to vector<1x64xf32>
    %54 = arith.addf %52, %53 : vector<1x64xf32>
    %55 = math.rsqrt %54 : vector<1x64xf32>
    %56 = arith.mulf %38, %55 : vector<1x64xf32>
    %57 = arith.mulf %43, %56 : vector<1x64xf32>
    %58 = arith.subf %39, %57 : vector<1x64xf32>
    %cst_30 = arith.constant 0.000000e+00 : bf16
    %59 = vector.broadcast %cst_30 : bf16 to vector<2x8x64xbf16>
    %c0_31 = arith.constant 0 : index
    %c0_32 = arith.constant 0 : index
    %c0_33 = arith.constant 0 : index
    %60 = vector.load %arg12[%c0_31, %c0_32, %c0_33] : memref<2x32x64xbf16, #tpu.memory_space<vmem>>, vector<2x8x64xbf16>
    tpu.vector_store %arg12[%c0_31, %c0_32, %c0_33], %59 {strides = array<i32>} : memref<2x32x64xbf16, #tpu.memory_space<vmem>>, vector<2x8x64xbf16>,
    %cst_34 = arith.constant 0.000000e+00 : bf16
    %61 = vector.broadcast %cst_34 : bf16 to vector<2x8x64xbf16>
    %c0_35 = arith.constant 0 : index
    %c24 = arith.constant 24 : index
    %c0_36 = arith.constant 0 : index
    %62 = vector.load %arg12[%c0_35, %c24, %c0_36] : memref<2x32x64xbf16, #tpu.memory_space<vmem>>, vector<2x8x64xbf16>
    tpu.vector_store %arg12[%c0_35, %c24, %c0_36], %61 {strides = array<i32>} : memref<2x32x64xbf16, #tpu.memory_space<vmem>>, vector<2x8x64xbf16>,
    %63 = vector.broadcast %56 : vector<1x64xf32> to vector<32x64xf32>
    %64 = arith.mulf %37, %63 : vector<32x64xf32>
    %65 = vector.broadcast %58 : vector<1x64xf32> to vector<32x64xf32>
    %66 = arith.addf %64, %65 : vector<32x64xf32>
    %67 = vector.shape_cast %66 : vector<32x64xf32> to vector<2x16x64xf32>
    %68 = arith.truncf %67 : vector<2x16x64xf32> to vector<2x16x64xbf16>
    %c0_37 = arith.constant 0 : index
    %c8 = arith.constant 8 : index
    %c0_38 = arith.constant 0 : index
    %69 = vector.load %arg12[%c0_37, %c8, %c0_38] : memref<2x32x64xbf16, #tpu.memory_space<vmem>>, vector<2x16x64xbf16>
    tpu.vector_store %arg12[%c0_37, %c8, %c0_38], %68 {strides = array<i32>} : memref<2x32x64xbf16, #tpu.memory_space<vmem>>, vector<2x16x64xbf16>,
    %c0_39 = arith.constant 0 : index
    %c0_40 = arith.constant 0 : index
    %70 = vector.load %arg5[%c0_39, %c0_40] : memref<320x32xf32, #tpu.memory_space<vmem>>, vector<320x32xf32>
    %71 = arith.truncf %70 : vector<320x32xf32> to vector<320x32xbf16>
    %cst_41 = arith.constant 0.000000e+00 : f32
    %72 = vector.broadcast %cst_41 : f32 to vector<32x32xf32>
    %c0_42 = arith.constant 0 : index
    %c6 = arith.constant 6 : index
    %c0_43 = arith.constant 0 : index
    %73 = vector.load %arg12[%c0_42, %c6, %c0_43] : memref<2x32x64xbf16, #tpu.memory_space<vmem>>, vector<2x16x64xbf16>
    %74 = vector.shape_cast %73 : vector<2x16x64xbf16> to vector<32x64xbf16>
    %75 = vector.extract_strided_slice %71 {offsets = [0, 0], sizes = [64, 32], strides = [1, 1]} : vector<320x32xbf16> to vector<64x32xbf16>
    %cst_44 = arith.constant dense<0.000000e+00> : vector<32x32xf32>
    %76 = tpu.matmul %74, %75, %cst_44 {dimension_numbers = #tpu.dot_dimension_numbers<[1], [0], [0], [1], [0, 0, 1, 1], [], []>} : vector<32x64xbf16>, vector<64x32xbf16>, vector<32x32xf32> -> vector<32x32xf32>
    %77 = arith.addf %72, %76 : vector<32x32xf32>
    %c0_45 = arith.constant 0 : index
    %c7 = arith.constant 7 : index
    %c0_46 = arith.constant 0 : index
    %78 = vector.load %arg12[%c0_45, %c7, %c0_46] : memref<2x32x64xbf16, #tpu.memory_space<vmem>>, vector<2x16x64xbf16>
    %79 = vector.shape_cast %78 : vector<2x16x64xbf16> to vector<32x64xbf16>
    %80 = vector.extract_strided_slice %71 {offsets = [64, 0], sizes = [64, 32], strides = [1, 1]} : vector<320x32xbf16> to vector<64x32xbf16>
    %cst_47 = arith.constant dense<0.000000e+00> : vector<32x32xf32>
    %81 = tpu.matmul %79, %80, %cst_47 {dimension_numbers = #tpu.dot_dimension_numbers<[1], [0], [0], [1], [0, 0, 1, 1], [], []>} : vector<32x64xbf16>, vector<64x32xbf16>, vector<32x32xf32> -> vector<32x32xf32>
    %82 = arith.addf %77, %81 : vector<32x32xf32>
    %c0_48 = arith.constant 0 : index
    %c8_49 = arith.constant 8 : index
    %c0_50 = arith.constant 0 : index
    %83 = vector.load %arg12[%c0_48, %c8_49, %c0_50] : memref<2x32x64xbf16, #tpu.memory_space<vmem>>, vector<2x16x64xbf16>
    %84 = vector.shape_cast %83 : vector<2x16x64xbf16> to vector<32x64xbf16>
    %85 = vector.extract_strided_slice %71 {offsets = [128, 0], sizes = [64, 32], strides = [1, 1]} : vector<320x32xbf16> to vector<64x32xbf16>
    %cst_51 = arith.constant dense<0.000000e+00> : vector<32x32xf32>
    %86 = tpu.matmul %84, %85, %cst_51 {dimension_numbers = #tpu.dot_dimension_numbers<[1], [0], [0], [1], [0, 0, 1, 1], [], []>} : vector<32x64xbf16>, vector<64x32xbf16>, vector<32x32xf32> -> vector<32x32xf32>
    %87 = arith.addf %82, %86 : vector<32x32xf32>
    %c0_52 = arith.constant 0 : index
    %c9 = arith.constant 9 : index
    %c0_53 = arith.constant 0 : index
    %88 = vector.load %arg12[%c0_52, %c9, %c0_53] : memref<2x32x64xbf16, #tpu.memory_space<vmem>>, vector<2x16x64xbf16>
    %89 = vector.shape_cast %88 : vector<2x16x64xbf16> to vector<32x64xbf16>
    %90 = vector.extract_strided_slice %71 {offsets = [192, 0], sizes = [64, 32], strides = [1, 1]} : vector<320x32xbf16> to vector<64x32xbf16>
    %cst_54 = arith.constant dense<0.000000e+00> : vector<32x32xf32>
    %91 = tpu.matmul %89, %90, %cst_54 {dimension_numbers = #tpu.dot_dimension_numbers<[1], [0], [0], [1], [0, 0, 1, 1], [], []>} : vector<32x64xbf16>, vector<64x32xbf16>, vector<32x32xf32> -> vector<32x32xf32>
    %92 = arith.addf %87, %91 : vector<32x32xf32>
    %c0_55 = arith.constant 0 : index
    %c10 = arith.constant 10 : index
    %c0_56 = arith.constant 0 : index
    %93 = vector.load %arg12[%c0_55, %c10, %c0_56] : memref<2x32x64xbf16, #tpu.memory_space<vmem>>, vector<2x16x64xbf16>
    %94 = vector.shape_cast %93 : vector<2x16x64xbf16> to vector<32x64xbf16>
    %95 = vector.extract_strided_slice %71 {offsets = [256, 0], sizes = [64, 32], strides = [1, 1]} : vector<320x32xbf16> to vector<64x32xbf16>
    %cst_57 = arith.constant dense<0.000000e+00> : vector<32x32xf32>
    %96 = tpu.matmul %94, %95, %cst_57 {dimension_numbers = #tpu.dot_dimension_numbers<[1], [0], [0], [1], [0, 0, 1, 1], [], []>} : vector<32x64xbf16>, vector<64x32xbf16>, vector<32x32xf32> -> vector<32x32xf32>
    %97 = arith.addf %92, %96 : vector<32x32xf32>
    %c0_58 = arith.constant 0 : index
    %c0_59 = arith.constant 0 : index
    %98 = vector.load %arg6[%c0_58, %c0_59] : memref<1x32xf32, #tpu.memory_space<vmem>>, vector<1x32xf32>
    %99 = vector.broadcast %98 : vector<1x32xf32> to vector<32x32xf32>
    %100 = arith.addf %97, %99 : vector<32x32xf32>
    %cst_60 = arith.constant 0.000000e+00 : f32
    %101 = vector.broadcast %cst_60 : f32 to vector<32x32xf32>
    %102 = arith.maximumf %100, %101 : vector<32x32xf32>
    %c0_61 = arith.constant 0 : index
    %c0_62 = arith.constant 0 : index
    %103 = vector.load %arg7[%c0_61, %c0_62] : memref<1x32xf32, #tpu.memory_space<vmem>>, vector<1x32xf32>
    %c0_63 = arith.constant 0 : index
    %c0_64 = arith.constant 0 : index
    %104 = vector.load %arg8[%c0_63, %c0_64] : memref<1x32xf32, #tpu.memory_space<vmem>>, vector<1x32xf32>
    %cst_65 = arith.constant dense<0.000000e+00> : vector<32xf32>
    %105 = vector.multi_reduction <add>, %102, %cst_65 [0] : vector<32x32xf32> to vector<32xf32>
    %106 = vector.shape_cast %105 : vector<32xf32> to vector<1x32xf32>
    %cst_66 = arith.constant 3.125000e-02 : f32
    %107 = vector.broadcast %cst_66 : f32 to vector<1x32xf32>
    %108 = arith.mulf %106, %107 : vector<1x32xf32>
    %109 = arith.mulf %102, %102 : vector<32x32xf32>
    %cst_67 = arith.constant dense<0.000000e+00> : vector<32xf32>
    %110 = vector.multi_reduction <add>, %109, %cst_67 [0] : vector<32x32xf32> to vector<32xf32>
    %111 = vector.shape_cast %110 : vector<32xf32> to vector<1x32xf32>
    %cst_68 = arith.constant 3.125000e-02 : f32
    %112 = vector.broadcast %cst_68 : f32 to vector<1x32xf32>
    %113 = arith.mulf %111, %112 : vector<1x32xf32>
    %114 = arith.mulf %108, %108 : vector<1x32xf32>
    %115 = arith.subf %113, %114 : vector<1x32xf32>
    %cst_69 = arith.constant 0.000000e+00 : f32
    %116 = vector.broadcast %cst_69 : f32 to vector<1x32xf32>
    %117 = arith.maximumf %115, %116 : vector<1x32xf32>
    %cst_70 = arith.constant 9.99999974E-6 : f32
    %118 = vector.broadcast %cst_70 : f32 to vector<1x32xf32>
    %119 = arith.addf %117, %118 : vector<1x32xf32>
    %120 = math.rsqrt %119 : vector<1x32xf32>
    %121 = arith.mulf %103, %120 : vector<1x32xf32>
    %122 = arith.mulf %108, %121 : vector<1x32xf32>
    %123 = arith.subf %104, %122 : vector<1x32xf32>
    %cst_71 = arith.constant 0.000000e+00 : bf16
    %124 = vector.broadcast %cst_71 : bf16 to vector<2x8x32xbf16>
    %c0_72 = arith.constant 0 : index
    %c0_73 = arith.constant 0 : index
    %c0_74 = arith.constant 0 : index
    %125 = vector.load %arg13[%c0_72, %c0_73, %c0_74] : memref<2x32x32xbf16, #tpu.memory_space<vmem>>, vector<2x8x32xbf16>
    tpu.vector_store %arg13[%c0_72, %c0_73, %c0_74], %124 {strides = array<i32>} : memref<2x32x32xbf16, #tpu.memory_space<vmem>>, vector<2x8x32xbf16>,
    %cst_75 = arith.constant 0.000000e+00 : bf16
    %126 = vector.broadcast %cst_75 : bf16 to vector<2x8x32xbf16>
    %c0_76 = arith.constant 0 : index
    %c24_77 = arith.constant 24 : index
    %c0_78 = arith.constant 0 : index
    %127 = vector.load %arg13[%c0_76, %c24_77, %c0_78] : memref<2x32x32xbf16, #tpu.memory_space<vmem>>, vector<2x8x32xbf16>
    tpu.vector_store %arg13[%c0_76, %c24_77, %c0_78], %126 {strides = array<i32>} : memref<2x32x32xbf16, #tpu.memory_space<vmem>>, vector<2x8x32xbf16>,
    %128 = vector.broadcast %121 : vector<1x32xf32> to vector<32x32xf32>
    %129 = arith.mulf %102, %128 : vector<32x32xf32>
    %130 = vector.broadcast %123 : vector<1x32xf32> to vector<32x32xf32>
    %131 = arith.addf %129, %130 : vector<32x32xf32>
    %132 = vector.shape_cast %131 : vector<32x32xf32> to vector<2x16x32xf32>
    %133 = arith.truncf %132 : vector<2x16x32xf32> to vector<2x16x32xbf16>
    %c0_79 = arith.constant 0 : index
    %c8_80 = arith.constant 8 : index
    %c0_81 = arith.constant 0 : index
    %134 = vector.load %arg13[%c0_79, %c8_80, %c0_81] : memref<2x32x32xbf16, #tpu.memory_space<vmem>>, vector<2x16x32xbf16>
    tpu.vector_store %arg13[%c0_79, %c8_80, %c0_81], %133 {strides = array<i32>} : memref<2x32x32xbf16, #tpu.memory_space<vmem>>, vector<2x16x32xbf16>,
    %c0_82 = arith.constant 0 : index
    %c0_83 = arith.constant 0 : index
    %135 = vector.load %arg9[%c0_82, %c0_83] : memref<5x32xf32, #tpu.memory_space<vmem>>, vector<5x32xf32>
    %cst_84 = arith.constant 0.000000e+00 : f32
    %136 = vector.broadcast %cst_84 : f32 to vector<2x16x32xf32>
    %c0_85 = arith.constant 0 : index
    %c6_86 = arith.constant 6 : index
    %c0_87 = arith.constant 0 : index
    %137 = vector.load %arg13[%c0_85, %c6_86, %c0_87] : memref<2x32x32xbf16, #tpu.memory_space<vmem>>, vector<2x16x32xbf16>
    %138 = arith.extf %137 : vector<2x16x32xbf16> to vector<2x16x32xf32>
    %139 = vector.extract_strided_slice %135 {offsets = [0, 0], sizes = [1, 32], strides = [1, 1]} : vector<5x32xf32> to vector<1x32xf32>
    %140 = vector.shape_cast %139 : vector<1x32xf32> to vector<32xf32>
    %141 = vector.shape_cast %140 : vector<32xf32> to vector<1x1x32xf32>
    %142 = vector.broadcast %141 : vector<1x1x32xf32> to vector<2x16x32xf32>
    %143 = arith.mulf %138, %142 : vector<2x16x32xf32>
    %144 = arith.addf %136, %143 : vector<2x16x32xf32>
    %c0_88 = arith.constant 0 : index
    %c7_89 = arith.constant 7 : index
    %c0_90 = arith.constant 0 : index
    %145 = vector.load %arg13[%c0_88, %c7_89, %c0_90] : memref<2x32x32xbf16, #tpu.memory_space<vmem>>, vector<2x16x32xbf16>
    %146 = arith.extf %145 : vector<2x16x32xbf16> to vector<2x16x32xf32>
    %147 = vector.extract_strided_slice %135 {offsets = [1, 0], sizes = [1, 32], strides = [1, 1]} : vector<5x32xf32> to vector<1x32xf32>
    %148 = vector.shape_cast %147 : vector<1x32xf32> to vector<32xf32>
    %149 = vector.shape_cast %148 : vector<32xf32> to vector<1x1x32xf32>
    %150 = vector.broadcast %149 : vector<1x1x32xf32> to vector<2x16x32xf32>
    %151 = arith.mulf %146, %150 : vector<2x16x32xf32>
    %152 = arith.addf %144, %151 : vector<2x16x32xf32>
    %c0_91 = arith.constant 0 : index
    %c8_92 = arith.constant 8 : index
    %c0_93 = arith.constant 0 : index
    %153 = vector.load %arg13[%c0_91, %c8_92, %c0_93] : memref<2x32x32xbf16, #tpu.memory_space<vmem>>, vector<2x16x32xbf16>
    %154 = arith.extf %153 : vector<2x16x32xbf16> to vector<2x16x32xf32>
    %155 = vector.extract_strided_slice %135 {offsets = [2, 0], sizes = [1, 32], strides = [1, 1]} : vector<5x32xf32> to vector<1x32xf32>
    %156 = vector.shape_cast %155 : vector<1x32xf32> to vector<32xf32>
    %157 = vector.shape_cast %156 : vector<32xf32> to vector<1x1x32xf32>
    %158 = vector.broadcast %157 : vector<1x1x32xf32> to vector<2x16x32xf32>
    %159 = arith.mulf %154, %158 : vector<2x16x32xf32>
    %160 = arith.addf %152, %159 : vector<2x16x32xf32>
    %c0_94 = arith.constant 0 : index
    %c9_95 = arith.constant 9 : index
    %c0_96 = arith.constant 0 : index
    %161 = vector.load %arg13[%c0_94, %c9_95, %c0_96] : memref<2x32x32xbf16, #tpu.memory_space<vmem>>, vector<2x16x32xbf16>
    %162 = arith.extf %161 : vector<2x16x32xbf16> to vector<2x16x32xf32>
    %163 = vector.extract_strided_slice %135 {offsets = [3, 0], sizes = [1, 32], strides = [1, 1]} : vector<5x32xf32> to vector<1x32xf32>
    %164 = vector.shape_cast %163 : vector<1x32xf32> to vector<32xf32>
    %165 = vector.shape_cast %164 : vector<32xf32> to vector<1x1x32xf32>
    %166 = vector.broadcast %165 : vector<1x1x32xf32> to vector<2x16x32xf32>
    %167 = arith.mulf %162, %166 : vector<2x16x32xf32>
    %168 = arith.addf %160, %167 : vector<2x16x32xf32>
    %c0_97 = arith.constant 0 : index
    %c10_98 = arith.constant 10 : index
    %c0_99 = arith.constant 0 : index
    %169 = vector.load %arg13[%c0_97, %c10_98, %c0_99] : memref<2x32x32xbf16, #tpu.memory_space<vmem>>, vector<2x16x32xbf16>
    %170 = arith.extf %169 : vector<2x16x32xbf16> to vector<2x16x32xf32>
    %171 = vector.extract_strided_slice %135 {offsets = [4, 0], sizes = [1, 32], strides = [1, 1]} : vector<5x32xf32> to vector<1x32xf32>
    %172 = vector.shape_cast %171 : vector<1x32xf32> to vector<32xf32>
    %173 = vector.shape_cast %172 : vector<32xf32> to vector<1x1x32xf32>
    %174 = vector.broadcast %173 : vector<1x1x32xf32> to vector<2x16x32xf32>
    %175 = arith.mulf %170, %174 : vector<2x16x32xf32>
    %176 = arith.addf %168, %175 : vector<2x16x32xf32>
    %cst_100 = arith.constant dense<0.000000e+00> : vector<2x16xf32>
    %177 = vector.multi_reduction <add>, %176, %cst_100 [2] : vector<2x16x32xf32> to vector<2x16xf32>
    %c0_101 = arith.constant 0 : index
    %c0_102 = arith.constant 0 : index
    %178 = vector.load %arg10[%c0_101, %c0_102] : memref<1x1xf32, #tpu.memory_space<vmem>>, vector<1x1xf32>
    %179 = vector.broadcast %178 : vector<1x1xf32> to vector<2x16xf32>
    %180 = arith.addf %177, %179 : vector<2x16xf32>
    %cst_103 = arith.constant 0.000000e+00 : f32
    %181 = vector.broadcast %cst_103 : f32 to vector<2x16xf32>
    %182 = arith.maximumf %180, %181 : vector<2x16xf32>
    %c0_104 = arith.constant 0 : index
    %c0_105 = arith.constant 0 : index
    %183 = vector.load %arg11[%c0_104, %c0_105] : memref<2x16xf32, #tpu.memory_space<vmem>>, vector<2x16xf32>
    tpu.vector_store %arg11[%c0_104, %c0_105], %182 {strides = array<i32>} : memref<2x16xf32, #tpu.memory_space<vmem>>, vector<2x16xf32>,
    return
  }
}

</mosaic_0001>

<bundles_post_ra>
// kernel: tpu_custom_call.1
= control target key start
LH: loop header
LB: loop body
LE: loop exit
PB: predicated region body
PF: predicated region fallthrough
CT: control target
= control target key end

     0   :  { %s2113_s0 = inlined_call_operand.vmem [shape: f32[2,20,4], index: 0, kind: input, shape index: {}]   ;;  %s2114_s1 = inlined_call_operand.vmem [shape: f32[20,64], index: 1, kind: input, shape index: {}]   ;;  %s2115_s2 = inlined_call_operand.vmem [shape: f32[1,64], index: 2, kind: input, shape index: {}]   ;;  %s2116_s3 = inlined_call_operand.vmem [shape: f32[1,64], index: 3, kind: input, shape index: {}]   ;;  %s2117_s4 = inlined_call_operand.vmem [shape: f32[1,64], index: 4, kind: input, shape index: {}]   ;;  %s2118_s5 = inlined_call_operand.vmem [shape: f32[320,32], index: 5, kind: input, shape index: {}]   ;;  %s2119_s6 = inlined_call_operand.vmem [shape: f32[1,32], index: 6, kind: input, shape index: {}]   ;;  %s2120_s7 = inlined_call_operand.vmem [shape: f32[1,32], index: 7, kind: input, shape index: {}]   ;;  %s2121_s8 = inlined_call_operand.vmem [shape: f32[1,32], index: 8, kind: input, shape index: {}]   ;;  %s2122_s9 = inlined_call_operand.vmem [shape: f32[5,32], index: 9, kind: input, shape index: {}]   ;;  %s2123_s10 = inlined_call_operand.<no memory space> [shape: f32[1,1], index: 10, kind: input, shape index: {}]   ;;  %s2124_s11 = inlined_call_operand.hbm [shape: f32[2,16], index: 11, kind: output, shape index: {}]  }
   0x1   :  { %v16_v0 = vstv %s2123_s10 }
   0x2   :  { %17 = vst [vmem:[#allocation4] sm:$0x1] %v16_v0 }
   0x3   :  { %v42_v1 = vld [vmem:[%s2114_s1] sm:$0xff]  ;;  %v43_v2 = vld [vmem:[%s2114_s1 + $0x8] sm:$0xff]  ;;  %vm61_vm0 = vcmask 31744   ;;  %vm68_vm1 = vcmask 1041408  }
   0x4   :  { %v53_v3 = vld [vmem:[%s2113_s0 + $0x1] sm:$0xff]  ;;  %v45_v4 = vpack.c.bf16 %v43_v2, %v42_v1  ;;  %v54_v5 = vld [vmem:[%s2113_s0 + $0x9] sm:$0xff]  ;;  %v55_v7 = vld [vmem:[%s2113_s0 + $0x19] sm:$0xff] }
   0x5   :  { %v57_v6 = vpack.c.bf16 %v54_v5, %v53_v3  ;;  %v56_v8 = vld [vmem:[%s2113_s0 + $0x21] sm:$0xff] }
   0x6   :  { %v60_v9 = vrot.slane %v45_v4, 2  ;;  %v47_v10 = vld [vmem:[%s2113_s0] sm:$0xff]  ;;  %v48_v11 = vld [vmem:[%s2113_s0 + $0x8] sm:$0xff]  ;;  %v58_v13 = vpack.c.bf16 %v56_v8, %v55_v7  ;;  %v128_v15 = vsel %vm68_vm1, %v45_v4, 0  ;;  %v185_v16 = vrot.slane %v45_v4, 4 }
   0x7   :  { %1440 = vmatprep.mubr.msk.bf16.mxu0 %vm61_vm0, %v57_v6  ;;  %v51_v14 = vpack.c.bf16 %v48_v11, %v47_v10 }
   0x8   :  { %1560 = vmatprep.subr.msk.bf16.mxu0 %vm68_vm1, %v60_v9  ;;  %v70_v12 = vsel %vm68_vm1, %v60_v9, 0 }
   0x9   :  { %1439 = vmatpush3.bf16.msra.mxu0 %v70_v12 }
   0xa   :  { %1561 = vmatprep.subr.msk.bf16.mxu0 %vm68_vm1, %v45_v4 }
   0xb   :  { %18 = vsyncpa [#allocation6], 0  ;;  %v49_v17 = vld [vmem:[%s2113_s0 + $0x18] sm:$0xff]  ;;  %v50_v18 = vld [vmem:[%s2113_s0 + $0x20] sm:$0xff]  ;;  %v193_v23 = vsel %vm68_vm1, %v185_v16, 0  ;;  %v254_v24 = vrot.slane %v45_v4, 6 }
   0xc   :  { %1441 = vmatmul.mubr.msk.bf16.vlgmr.msra.gmra.mrb[0].mxu0 %vm61_vm0, %v58_v13  ;;  %v179_v19 = vld [vmem:[%s2113_s0 + $0x2] sm:$0xff]  ;;  %v180_v20 = vld [vmem:[%s2113_s0 + $0xa] sm:$0xff]  ;;  %v52_v21 = vpack.c.bf16 %v50_v18, %v49_v17  ;;  %v181_v25 = vld [vmem:[%s2113_s0 + $0x1a] sm:$0xff]  ;;  %vm443_vm2 = vcmask 519168   ;;  %vm446_vm3 = vcmask 523268   ;;  %v1596_v44 = vmov 0  }
   0xd   :  { %1445 = vmatpush3.bf16.msra.mxu0 %v128_v15  ;;  %1446 = vmatprep.mubr.msk.bf16.mxu0 %vm61_vm0, %v51_v14  ;;  %v183_v22 = vpack.c.bf16 %v180_v20, %v179_v19  ;;  %v182_v26 = vld [vmem:[%s2113_s0 + $0x22] sm:$0xff]  ;;  %v249_v28 = vld [vmem:[%s2113_s0 + $0xb] sm:$0xff]  ;;  %v262_v32 = vsel %vm68_vm1, %v254_v24, 0  ;;  %444 = vst.msk [vmem:[#allocation2] sm:$0xf] %vm443_vm2, %v1596_v44  ;;  %v484_v49 = vld [vmem:[%s2118_s5 + $0x18] sm:$0xff] }
   0xe   :  { %1562 = vmatprep.subr.msk.bf16.mxu0 %vm68_vm1, %v185_v16  ;;  %v248_v27 = vld [vmem:[%s2113_s0 + $0x3] sm:$0xff]  ;;  %v44_v29 = vld [vmem:[%s2114_s1 + $0x10] sm:$0xf]  ;;  %v184_v30 = vpack.c.bf16 %v182_v26, %v181_v25  ;;  %v250_v34 = vld [vmem:[%s2113_s0 + $0x1b] sm:$0xff]  ;;  %445 = vst.msk [vmem:[#allocation2 + $0x10] sm:$0xf] %vm443_vm2, %v1596_v44  ;;  %1567 = vset.pattern.permute.xlu0 %v1596_v44 }
   0xf   :  { %v252_v31 = vpack.c.bf16 %v249_v28, %v248_v27  ;;  %v46_v33 = vpack.c.bf16 %v44_v29, %v44_v29  ;;  %v251_v35 = vld [vmem:[%s2113_s0 + $0x23] sm:$0xff]  ;;  %v318_v37 = vld [vmem:[%s2113_s0 + $0xc] sm:$0xff]  ;;  %447 = vst.msk [vmem:[#allocation2 + $0x8] sm:$0xf0] %vm446_vm3, %v1596_v44  ;;  %448 = vst.msk [vmem:[#allocation2 + $0x18] sm:$0xf0] %vm446_vm3, %v1596_v44 }
  0x10   :  { %v317_v36 = vld [vmem:[%s2113_s0 + $0x4] sm:$0xff]  ;;  %v253_v38 = vpack.c.bf16 %v251_v35, %v250_v34  ;;  %v319_v41 = vld [vmem:[%s2113_s0 + $0x1c] sm:$0xff]  ;;  %v483_v48 = vld [vmem:[%s2118_s5 + $0x10] sm:$0xff]  ;;  %vm402_vm4 = vcmask 523264   ;;  %vm549_vm5 = vcmask 1044480   ;;  %vm709_vm6 = vcmask 1043456  }
  0x11   :  { %v321_v39 = vpack.c.bf16 %v318_v37, %v317_v36  ;;  %v330_v40 = vsel %vm68_vm1, %v46_v33, 0  ;;  %v320_v42 = vld [vmem:[%s2113_s0 + $0x24] sm:$0xff]  ;;  %v522_v50 = vpack.c.bf16 %v484_v49, %v483_v48  ;;  %v491_v56 = vld [vmem:[%s2118_s5 + $0x50] sm:$0xff]  ;;  %v492_v58 = vld [vmem:[%s2118_s5 + $0x58] sm:$0xff]  ;;  %vm558_vm7 = vsmask.f32 4352 }
  0x12   :  { %v322_v43 = vpack.c.bf16 %v320_v42, %v319_v41  ;;  %v481_v45 = vld [vmem:[%s2118_s5] sm:$0xff]  ;;  %v482_v46 = vld [vmem:[%s2118_s5 + $0x8] sm:$0xff]  ;;  %v487_v59 = vld [vmem:[%s2118_s5 + $0x30] sm:$0xff]  ;;  %v526_v61 = vpack.c.bf16 %v492_v58, %v491_v56  ;;  %v450_v58 = vlaneseq  ;;  %vm777_vm8 = vsmask.f32 3328 }
  0x13   :  { %v521_v47 = vpack.c.bf16 %v482_v46, %v481_v45  ;;  %v489_v51 = vld [vmem:[%s2118_s5 + $0x40] sm:$0xff]  ;;  %v490_v52 = vld [vmem:[%s2118_s5 + $0x48] sm:$0xff]  ;;  %v488_v60 = vld [vmem:[%s2118_s5 + $0x38] sm:$0xff]  ;;  %vm877_vm9 = vcmask 1042432   ;;  %vm1001_vm10 = vcmask 257024   ;;  %vm1004_vm11 = vcmask 261124  }
  0x14   :  { %v525_v53 = vpack.c.bf16 %v490_v52, %v489_v51  ;;  %v485_v54 = vld [vmem:[%s2118_s5 + $0x20] sm:$0xff]  ;;  %v486_v55 = vld [vmem:[%s2118_s5 + $0x28] sm:$0xff]  ;;  %v524_v62 = vpack.c.bf16 %v488_v60, %v487_v59  ;;  %v495_v5 = vld [vmem:[%s2118_s5 + $0x70] sm:$0xff]  ;;  %v1828_v59 = vshrl.u32 %v450_v58, 7  ;;  %1002 = vst.msk [vmem:[#allocation3] sm:$0xf] %vm1001_vm10, %v1596_v44 }
  0x15   :  { %1480 = vmatprep.subr.bf16.mxu1 %v521_v47  ;;  %v523_v57 = vpack.c.bf16 %v486_v55, %v485_v54  ;;  %v493_v63 = vld [vmem:[%s2118_s5 + $0x60] sm:$0xff]  ;;  %v494_v0 = vld [vmem:[%s2118_s5 + $0x68] sm:$0xff]  ;;  %v496_v6 = vld [vmem:[%s2118_s5 + $0x78] sm:$0xff]  ;;  %1003 = vst.msk [vmem:[#allocation3 + $0x10] sm:$0xf] %vm1001_vm10, %v1596_v44  ;;  %vm960_vm12 = vcmask 261120  }
  0x16   :  { %1481 = vmatpush3.bf16.msra.mxu1 %v521_v47  ;;  %v527_v1 = vpack.c.bf16 %v494_v0, %v493_v63  ;;  %v497_v2 = vld [vmem:[%s2118_s5 + $0x80] sm:$0xff]  ;;  %v498_v3 = vld [vmem:[%s2118_s5 + $0x88] sm:$0xff]  ;;  %v528_v7 = vpack.c.bf16 %v496_v6, %v495_v5  ;;  %1005 = vst.msk [vmem:[#allocation3 + $0x8] sm:$0xf0] %vm1004_vm11, %v1596_v44  ;;  %1006 = vst.msk [vmem:[#allocation3 + $0x18] sm:$0xf0] %vm1004_vm11, %v1596_v44 }
  0x17   :  { %1482 = vmatprep.subr.bf16.mxu1 %v522_v50  ;;  %v1807_v4 = vpack.c.bf16 %v498_v3, %v497_v2  ;;  %v1380_v8 = vld [vmem:[%s2115_s2] ss:$0 sm:$0xff]  ;;  %vm1086_vm13 = vcmask 1046528   ;;  %vm1268_vm14 = vcmask 261126   ;;  %vm1139_vm15 = vcmask 1045504  }
  0x18   :  { %1447 = vmatmul.mubr.msk.bf16.vlgmr.msra.gmra.mrb[0].mxu0 %vm61_vm0, %v52_v21  ;;  %v400_v60 = vld [vmem:[%s2116_s3] sm:$0x1] }
  0x19   :  { %1451 = vmatpush3.bf16.msra.mxu0 %v193_v23  ;;  %1452 = vmatprep.mubr.msk.bf16.mxu0 %vm61_vm0, %v183_v22  ;;  %v401_v0 = vld [vmem:[%s2117_s4] sm:$0x1] }
  0x1a   :  { %1563 = vmatprep.subr.msk.bf16.mxu0 %vm68_vm1, %v254_v24  ;;  %1483 = vmatpush3.bf16.msra.mxu1 %v522_v50 }
  0x1b   :  { %1484 = vmatprep.subr.bf16.mxu1 %v523_v57 }
  0x1e   :  { %1485 = vmatpush3.bf16.msra.mxu1 %v523_v57 }
  0x1f   :  { %1486 = vmatprep.subr.bf16.mxu1 %v524_v62 }
  0x22   :  { %1487 = vmatpush3.bf16.msra.mxu1 %v524_v62 }
  0x23   :  { %1492 = vmatprep.subr.bf16.mxu1 %v1807_v4 }
  0x24   :  { %1453 = vmatmul.mubr.msk.bf16.vlgmr.msra.gmra.mrb[0].mxu0 %vm61_vm0, %v184_v30 }
  0x25   :  { %1457 = vmatpush3.bf16.msra.mxu0 %v262_v32  ;;  %1458 = vmatprep.mubr.msk.bf16.mxu0 %vm61_vm0, %v252_v31 }
  0x26   :  { %1564 = vmatprep.subr.msk.bf16.mxu0 %vm68_vm1, %v46_v33  ;;  %vm1328_vm1 = vcmask 80912  }
  0x30   :  { %1459 = vmatmul.mubr.msk.bf16.vlgmr.msra.gmra.mrb[0].mxu0 %vm61_vm0, %v253_v38 }
  0x31   :  { %1463 = vmatpush3.bf16.msra.mxu0 %v330_v40  ;;  %1464 = vmatprep.mubr.msk.bf16.mxu0 %vm61_vm0, %v321_v39 }
  0x32   :  { %1468 = vmatprep.subr.bf16.mxu0 %v525_v53 }
  0x3c   :  { %1465 = vmatmul.mubr.msk.bf16.vlgmr.msra.gmra.mrb[0].mxu0 %vm61_vm0, %v322_v43  ;;  %vm1275_vm0 = vcmask 259072  }
  0x3d   :  { %1469 = vmatpush3.bf16.msra.mxu0 %v525_v53 }
  0x3e   :  { %1470 = vmatprep.subr.bf16.mxu0 %v526_v61 }
  0x41   :  { %1471 = vmatpush3.bf16.msra.mxu0 %v526_v61  ;;  %v1834_v61 = vsub.s32 0, %v1828_v59 }
  0x42   :  { %1472 = vmatprep.subr.bf16.mxu0 %v527_v1 }
  0x45   :  { %1473 = vmatpush3.bf16.msra.mxu0 %v527_v1 }
  0x46   :  { %1474 = vmatprep.subr.bf16.mxu0 %v528_v7 }
  0x49   :  { %1475 = vmatpush3.bf16.msra.mxu0 %v528_v7 }
 0x10f   :  { %v1466_v9 = vpop.f32.mrb[0].mxu0 }
 0x110   :  { %v394_v10 = vadd.f32 %v1466_v9, %v1380_v8  ;;  %v366_v11 = vpop.f32.mrb[1].mxu0 }
 0x111   :  { %v392_v12 = vadd.f32 %v1380_v8, %v366_v11  ;;  %v1467_v13 = vpop.f32.mrb[2].mxu0 }
 0x112   :  { %v395_v14 = vadd.f32 %v1467_v13, %v1380_v8  ;;  %v369_v15 = vpop.f32.mrb[3].mxu0  ;;  %v398_v16 = vmax.f32 %v394_v10, 0.0 }
 0x113   :  { %v396_v17 = vmax.f32 %v392_v12, 0.0  ;;  %v393_v18 = vadd.f32 %v1380_v8, %v369_v15 }
 0x114   :  { %v399_v20 = vmax.f32 %v395_v14, 0.0  ;;  %v419_v22 = vmul.f32 %v398_v16, %v398_v16  ;;  %v406_v27 = vsel %vm402_vm4, %v398_v16, 0.0 }
 0x115   :  { %v417_v19 = vmul.f32 %v396_v17, %v396_v17  ;;  %v397_v21 = vmax.f32 %v393_v18, 0.0  ;;  %v403_v23 = vsel %vm402_vm4, %v396_v17, 0.0 }
 0x116   :  { %v420_v29 = vmul.f32 %v399_v20, %v399_v20  ;;  %v424_v33 = vsel %vm402_vm4, %v419_v22, 0.0  ;;  %v408_v34 = vsel %vm402_vm4, %v399_v20, 0.0 }
 0x117   :  { %v404_v24 = vsel %vm402_vm4, %v397_v21, 0.0  ;;  %v418_v25 = vmul.f32 %v397_v21, %v397_v21  ;;  %v421_v28 = vsel %vm402_vm4, %v417_v19, 0.0 }
 0x118   :  { %v405_v26 = vadd.f32 %v404_v24, %v403_v23  ;;  %v426_v37 = vsel %vm402_vm4, %v420_v29, 0.0 }
 0x119   :  { %v422_v30 = vsel %vm402_vm4, %v418_v25, 0.0 }
 0x11a   :  { %v407_v31 = vadd.f32 %v406_v27, %v405_v26  ;;  %v423_v32 = vadd.f32 %v422_v30, %v421_v28 }
 0x11c   :  { %v409_v35 = vadd.f32 %v408_v34, %v407_v31  ;;  %v425_v36 = vadd.f32 %v424_v33, %v423_v32 }
 0x11e   :  { %v410_v38 = vrot.slane %v409_v35, 4  ;;  %v427_v39 = vadd.f32 %v426_v37, %v425_v36 }
 0x120   :  { %v411_v40 = vadd.f32 %v410_v38, %v409_v35  ;;  %v428_v41 = vrot.slane %v427_v39, 4 }
 0x122   :  { %v412_v42 = vrot.slane %v411_v40, 2  ;;  %v429_v43 = vadd.f32 %v428_v41, %v427_v39  ;;  %v501_v39 = vld [vmem:[%s2118_s5 + $0xa0] sm:$0xff] }
 0x124   :  { %v413_v45 = vadd.f32 %v412_v42, %v411_v40  ;;  %v430_v46 = vrot.slane %v429_v43, 2 }
 0x126   :  { %v414_v47 = vrot.slane %v413_v45, 1  ;;  %v431_v48 = vadd.f32 %v430_v46, %v429_v43  ;;  %v502_v46 = vld [vmem:[%s2118_s5 + $0xa8] sm:$0xff] }
 0x128   :  { %v415_v49 = vadd.f32 %v414_v47, %v413_v45  ;;  %v432_v50 = vrot.slane %v431_v48, 1 }
 0x12a   :  { %v416_v51 = vmul.f32 0.03125, %v415_v49  ;;  %v433_v52 = vadd.f32 %v432_v50, %v431_v48 }
 0x12c   :  { %v434_v53 = vmul.f32 0.03125, %v433_v52  ;;  %v435_v54 = vmul.f32 %v416_v51, %v416_v51 }
 0x12e   :  { %v436_v55 = vsub.f32 %v434_v53, %v435_v54 }
 0x130   :  { %v437_v56 = vmax.f32 %v436_v55, 0.0 }
 0x132   :  { %v438_v57 = vadd.f32 1e-05, %v437_v56 }
 0x134   :  { %1568 = vrsqrt.f32 %v438_v57  ;;  %v531_v57 = vpack.c.bf16 %v502_v46, %v501_v39 }
 0x13e   :  { %v1569_v62 = vpop.eup %1568 }
 0x13f   :  { %v440_v63 = vmul.f32 %v1569_v62, %v400_v60 }
 0x141   :  { %v441_v1 = vmul.f32 %v440_v63, %v416_v51  ;;  %v453_v2 = vrot.slane %v440_v63, %v1834_v61 }
 0x143   :  { %v442_v3 = vsub.f32 %v401_v0, %v441_v1  ;;  %v455_v5 = vmul.f32 %v453_v2, %v396_v17  ;;  %v456_v6 = vmul.f32 %v453_v2, %v397_v21  ;;  %v457_v7 = vmul.f32 %v453_v2, %v398_v16  ;;  %v499_v16 = vld [vmem:[%s2118_s5 + $0x90] sm:$0xff]  ;;  %v500_v17 = vld [vmem:[%s2118_s5 + $0x98] sm:$0xff] }
 0x144   :  { %v458_v8 = vmul.f32 %v453_v2, %v399_v20  ;;  %v530_v23 = vpack.c.bf16 %v500_v17, %v499_v16  ;;  %v504_v0 = vld [vmem:[%s2118_s5 + $0xb8] sm:$0xff] }
 0x145   :  { %v463_v9 = vrot.slane %v442_v3, %v1834_v61 }
 0x147   :  { %v465_v10 = vadd.f32 %v463_v9, %v455_v5  ;;  %v466_v11 = vadd.f32 %v463_v9, %v456_v6  ;;  %v467_v12 = vadd.f32 %v463_v9, %v457_v7  ;;  %v468_v13 = vadd.f32 %v463_v9, %v458_v8 }
 0x149   :  { %v469_v14 = vpack.c.bf16 %v466_v11, %v465_v10  ;;  %v470_v15 = vpack.c.bf16 %v468_v13, %v467_v12  ;;  %v505_v10 = vld [vmem:[%s2118_s5 + $0xc0] sm:$0xff]  ;;  %v506_v11 = vld [vmem:[%s2118_s5 + $0xc8] sm:$0xff] }
 0x14b   :  { %v473_v18 = vrot.slane %v469_v14, 4  ;;  %v474_v19 = vrot.slane %v470_v15, 4 }
 0x14d   :  { %477 = vst.msk [vmem:[#allocation2] sm:$0xf0] %vm446_vm3, %v473_v18  ;;  %479 = vst.msk [vmem:[#allocation2 + $0x10] sm:$0xf0] %vm446_vm3, %v474_v19  ;;  %vm1351_vm3 = vcmask 1047559  }
 0x14e   :  { %478 = vst.msk [vmem:[#allocation2 + $0x8] sm:$0xf] %vm443_vm2, %v473_v18  ;;  %480 = vst.msk [vmem:[#allocation2 + $0x18] sm:$0xf] %vm443_vm2, %v474_v19  ;;  %v533_v19 = vpack.c.bf16 %v506_v11, %v505_v10  ;;  %v1391_v10 = vld [vmem:[%s2119_s6] ss:$0 sm:$0xff] }
 0x14f   :  { %vm1335_vm2 = vcmask 146512  }
 0x154   :  { %v541_v20 = vld [vmem:[#allocation2] sm:$0xf8]  ;;  %v543_v22 = vld [vmem:[#allocation2 + $0x10] sm:$0xf8] }
 0x155   :  { %v542_v21 = vld [vmem:[#allocation2 + $0x8] sm:$0x7]  ;;  %v550_v24 = vrot.slane %v541_v20, 3  ;;  %v560_v26 = vshrl.u32 %v541_v20, 16  ;;  %v563_v27 = vshll.u32 %v541_v20, 16  ;;  %v553_v29 = vrot.slane %v543_v22, 3 }
 0x156   :  { %v551_v25 = vrot.slane %v542_v21, 3  ;;  %v544_v28 = vld [vmem:[#allocation2 + $0x18] sm:$0x7]  ;;  %v577_v31 = vshrl.u32 %v543_v22, 16  ;;  %v580_v32 = vshll.u32 %v543_v22, 16  ;;  %v507_v20 = vld [vmem:[%s2118_s5 + $0xd0] sm:$0xff] }
 0x157   :  { %v554_v30 = vrot.slane %v544_v28, 3  ;;  %v556_v33 = vld [vmem:[#allocation2 + $0x8] sm:$0xf]  ;;  %v703_v35 = vld [vmem:[#allocation2] sm:$0xf0]  ;;  %v562_v37 = vrot.slane %v560_v26, 3 }
 0x158   :  { %v552_v34 = vsel %vm549_vm5, %v550_v24, %v551_v25  ;;  %v711_v36 = vrot.slane %v556_v33, 4  ;;  %v565_v38 = vrot.slane %v563_v27, 4  ;;  %v710_v41 = vrot.slane %v703_v35, 4  ;;  %v557_v45 = vld [vmem:[#allocation2 + $0x18] sm:$0xf]  ;;  %v509_v26 = vld [vmem:[%s2118_s5 + $0xe0] sm:$0xff] }
 0x159   :  { %1488 = vmatprep.mubr.msk.bf16.mxu1 %vm402_vm4, %v552_v34  ;;  %v555_v40 = vsel %vm549_vm5, %v553_v29, %v554_v30  ;;  %v568_v42 = vshrl.u32 %v556_v33, 16  ;;  %v571_v43 = vshll.u32 %v556_v33, 16  ;;  %v579_v48 = vrot.slane %v577_v31, 3  ;;  %v1863_v55 = vld [vmem:[#allocation2 + $0x8] sm:$0x1f]  ;;  %v508_v21 = vld [vmem:[%s2118_s5 + $0xd8] sm:$0xff] }
 0x15a   :  { %1489 = vmatmul.mubr.msk.bf16.vlgmr.msra.gmra.mrb[0].mxu1 %vm402_vm4, %v555_v40  ;;  %v566_v47 = vor.u32 %v565_v38, %v562_v37  ;;  %v582_v49 = vrot.slane %v580_v32, 4  ;;  %v585_v50 = vshrl.u32 %v557_v45, 16  ;;  %v712_v51 = vsel %vm709_vm6, %v710_v41, %v711_v36  ;;  %v704_v12 = vld [vmem:[#allocation2 + $0x10] sm:$0xf0]  ;;  %v510_v27 = vld [vmem:[%s2118_s5 + $0xe8] sm:$0xff]  ;;  %v512_v32 = vld [vmem:[%s2118_s5 + $0xf8] sm:$0xff] }
 0x15b   :  { %1493 = vmatpush3.bf16.msra.mxu1 %v1807_v4  ;;  %v570_v52 = vrot.slane %v568_v42, 3  ;;  %v573_v53 = vrot.slane %v571_v43, 4  ;;  %v588_v54 = vshll.u32 %v557_v45, 16  ;;  %1500 = vmatprep.mubr.msk.bf16.mxu1 %vm402_vm4, %v712_v51  ;;  %v503_v4 = vld [vmem:[%s2118_s5 + $0xb0] sm:$0xff]  ;;  %v779_v1 = vshrl.u32 %v703_v35, 16  ;;  %v513_v42 = vld [vmem:[%s2118_s5 + $0x100] sm:$0xff] }
 0x15c   :  { %1494 = vmatprep.subr.bf16.mxu1 %v530_v23  ;;  %v587_v56 = vrot.slane %v585_v50, 3  ;;  %v583_v62 = vor.u32 %v582_v49, %v579_v48  ;;  %v782_v2 = vshll.u32 %v703_v35, 16  ;;  %v787_v3 = vshrl.u32 %v1863_v55, 16  ;;  %v776_v29 = vld [vmem:[#allocation2 + $0x18] sm:$0x1f]  ;;  %v511_v31 = vld [vmem:[%s2118_s5 + $0xf0] sm:$0xff] }
 0x15d   :  { %v574_v60 = vor.u32 %v573_v53, %v570_v52  ;;  %v590_v63 = vrot.slane %v588_v54, 4  ;;  %v790_v5 = vshll.u32 %v1863_v55, 16  ;;  %v532_v8 = vpack.c.bf16 %v504_v0, %v503_v4  ;;  %v514_v43 = vld [vmem:[%s2118_s5 + $0x108] sm:$0xff]  ;;  %v515_v49 = vld [vmem:[%s2118_s5 + $0x110] sm:$0xff]  ;;  %v516_v50 = vld [vmem:[%s2118_s5 + $0x118] sm:$0xff] }
 0x15e   :  { %v781_v13 = vrot.slane %v779_v1, 4  ;;  %v784_v14 = vrot.slane %v782_v2, 5  ;;  %v789_v15 = vrot.slane %v787_v3, 4  ;;  %v713_v16 = vrot.slane %v704_v12, 4  ;;  %v872_v0 = vld [vmem:[#allocation2 + $0x10] sm:$0xe0] }
 0x15f   :  { %v575_v6 = vsel %vm558_vm7, %v566_v47, %v574_v60  ;;  %v591_v7 = vor.u32 %v590_v63, %v587_v56  ;;  %1495 = vmatpush3.bf16.msra.mxu1 %v530_v23  ;;  %v792_v18 = vrot.slane %v790_v5, 5  ;;  %v714_v17 = vrot.slane %v557_v45, 4  ;;  %v871_v45 = vld [vmem:[#allocation2] sm:$0xe0]  ;;  %v520_v63 = vld [vmem:[%s2118_s5 + $0x138] sm:$0xff] }
 0x160   :  { %1476 = vmatprep.mubr.msk.bf16.mxu0 %vm402_vm4, %v575_v6  ;;  %1496 = vmatprep.subr.bf16.mxu1 %v531_v57  ;;  %v785_v22 = vor.u32 %v784_v14, %v781_v13  ;;  %v534_v24 = vpack.c.bf16 %v508_v21, %v507_v20  ;;  %v535_v30 = vpack.c.bf16 %v510_v27, %v509_v26  ;;  %v796_v33 = vshrl.u32 %v704_v12, 16  ;;  %v517_v56 = vld [vmem:[%s2118_s5 + $0x120] sm:$0xff] }
 0x161   :  { %v592_v9 = vsel %vm558_vm7, %v583_v62, %v591_v7  ;;  %v793_v23 = vor.u32 %v792_v18, %v789_v15  ;;  %v715_v25 = vsel %vm709_vm6, %v713_v16, %v714_v17  ;;  %v799_v34 = vshll.u32 %v704_v12, 16  ;;  %v519_v62 = vld [vmem:[%s2118_s5 + $0x130] sm:$0xff] }
 0x162   :  { %1477 = vmatmul.mubr.msk.bf16.vlgmr.msra.gmra.mrb[4].mxu0 %vm402_vm4, %v592_v9  ;;  %v804_v35 = vshrl.u32 %v776_v29, 16  ;;  %v807_v36 = vshll.u32 %v776_v29, 16  ;;  %v536_v37 = vpack.c.bf16 %v512_v32, %v511_v31  ;;  %v798_v38 = vrot.slane %v796_v33, 4 }
 0x163   :  { %1497 = vmatpush3.bf16.msra.mxu1 %v531_v57  ;;  %v794_v28 = vsel %vm777_vm8, %v785_v22, %v793_v23  ;;  %v801_v39 = vrot.slane %v799_v34, 5  ;;  %v537_v46 = vpack.c.bf16 %v514_v43, %v513_v42  ;;  %v878_v51 = vrot.slane %v871_v45, 5  ;;  %v518_v57 = vld [vmem:[%s2118_s5 + $0x128] sm:$0xff] }
 0x164   :  { %1498 = vmatprep.subr.bf16.mxu1 %v532_v8  ;;  %v806_v40 = vrot.slane %v804_v35, 4  ;;  %v809_v41 = vrot.slane %v807_v36, 5  ;;  %v879_v52 = vrot.slane %v1863_v55, 5  ;;  %v538_v53 = vpack.c.bf16 %v516_v50, %v515_v49 }
 0x165   :  { %v802_v47 = vor.u32 %v801_v39, %v798_v38  ;;  %v539_v55 = vpack.c.bf16 %v518_v57, %v517_v56  ;;  %v540_v4 = vpack.c.bf16 %v520_v63, %v519_v62  ;;  %v881_v1 = vrot.slane %v872_v0, 5  ;;  %v958_v0 = vld [vmem:[%s2120_s7] sm:$0x1] }
 0x166   :  { %v810_v48 = vor.u32 %v809_v41, %v806_v40  ;;  %v880_v60 = vsel %vm877_vm9, %v878_v51, %v879_v52  ;;  %v882_v2 = vrot.slane %v776_v29, 5 }
 0x167   :  { %1499 = vmatpush3.bf16.msra.mxu1 %v532_v8 }
 0x168   :  { %1504 = vmatprep.subr.bf16.mxu1 %v533_v19  ;;  %v811_v54 = vsel %vm777_vm8, %v802_v47, %v810_v48  ;;  %v883_v3 = vsel %vm877_vm9, %v881_v1, %v882_v2 }
 0x16a   :  { %1501 = vmatmul.mubr.msk.bf16.vlgmr.msra.gmra.mrb[0].mxu1 %vm402_vm4, %v715_v25 }
 0x16b   :  { %1505 = vmatpush3.bf16.msra.mxu1 %v533_v19  ;;  %1512 = vmatprep.mubr.msk.bf16.mxu1 %vm402_vm4, %v794_v28 }
 0x16c   :  { %1506 = vmatprep.subr.bf16.mxu1 %v534_v24 }
 0x16f   :  { %1507 = vmatpush3.bf16.msra.mxu1 %v534_v24 }
 0x170   :  { %1508 = vmatprep.subr.bf16.mxu1 %v535_v30 }
 0x173   :  { %1509 = vmatpush3.bf16.msra.mxu1 %v535_v30 }
 0x174   :  { %1510 = vmatprep.subr.bf16.mxu1 %v536_v37 }
 0x177   :  { %1511 = vmatpush3.bf16.msra.mxu1 %v536_v37 }
 0x178   :  { %1516 = vmatprep.subr.bf16.mxu1 %v537_v46 }
 0x17a   :  { %1513 = vmatmul.mubr.msk.bf16.vlgmr.msra.gmra.mrb[0].mxu1 %vm402_vm4, %v811_v54 }
 0x17b   :  { %1517 = vmatpush3.bf16.msra.mxu1 %v537_v46  ;;  %1524 = vmatprep.mubr.msk.bf16.mxu1 %vm402_vm4, %v880_v60 }
 0x17c   :  { %1518 = vmatprep.subr.bf16.mxu1 %v538_v53 }
 0x17f   :  { %1519 = vmatpush3.bf16.msra.mxu1 %v538_v53 }
 0x180   :  { %1520 = vmatprep.subr.bf16.mxu1 %v539_v55 }
 0x183   :  { %1521 = vmatpush3.bf16.msra.mxu1 %v539_v55 }
 0x184   :  { %1522 = vmatprep.subr.bf16.mxu1 %v540_v4 }
 0x187   :  { %1523 = vmatpush3.bf16.msra.mxu1 %v540_v4 }
 0x18a   :  { %1525 = vmatmul.mubr.msk.bf16.vlgmr.msra.gmra.mrb[0].mxu1 %vm402_vm4, %v883_v3  ;;  %v959_v3 = vld [vmem:[%s2121_s8] sm:$0x1]  ;;  %vm1354_vm4 = vcmask 130054  }
 0x235   :  { %v1478_v5 = vpop.f32.mrb[4].mxu0 }
 0x236   :  { %v633_v6 = vpop.f32.mrb[5].mxu0 }
 0x237   :  { %v1479_v7 = vpop.f32.mrb[6].mxu0 }
 0x238   :  { %v636_v8 = vpop.f32.mrb[7].mxu0 }
 0x25d   :  { %v1526_v9 = vpop.f32.mrb[0].mxu1 }
 0x25e   :  { %v1528_v11 = vadd.f32 %v1526_v9, %v1478_v5  ;;  %v924_v12 = vpop.f32.mrb[1].mxu1 }
 0x25f   :  { %v1529_v13 = vadd.f32 %v924_v12, %v633_v6  ;;  %v1527_v14 = vpop.f32.mrb[2].mxu1 }
 0x260   :  { %v952_v15 = vadd.f32 %v1528_v11, %v1391_v10  ;;  %v1530_v18 = vadd.f32 %v1527_v14, %v1479_v7  ;;  %v927_v19 = vpop.f32.mrb[3].mxu1 }
 0x261   :  { %v950_v16 = vadd.f32 %v1529_v13, %v1391_v10  ;;  %v1531_v17 = vadd.f32 %v927_v19, %v636_v8 }
 0x262   :  { %v953_v20 = vadd.f32 %v1530_v18, %v1391_v10  ;;  %v956_v44 = vmax.f32 %v952_v15, 0.0 }
 0x263   :  { %v954_v21 = vmax.f32 %v950_v16, 0.0  ;;  %v951_v22 = vadd.f32 %v1531_v17, %v1391_v10 }
 0x264   :  { %v957_v24 = vmax.f32 %v953_v20, 0.0  ;;  %v977_v26 = vmul.f32 %v956_v44, %v956_v44  ;;  %v964_v31 = vsel %vm960_vm12, %v956_v44, 0.0 }
 0x265   :  { %v975_v23 = vmul.f32 %v954_v21, %v954_v21  ;;  %v955_v25 = vmax.f32 %v951_v22, 0.0  ;;  %v961_v27 = vsel %vm960_vm12, %v954_v21, 0.0  ;;  %v1129_v22 = vsub.s32 2, %v1828_v59 }
 0x266   :  { %v978_v33 = vmul.f32 %v957_v24, %v957_v24  ;;  %v982_v37 = vsel %vm960_vm12, %v977_v26, 0.0  ;;  %v966_v38 = vsel %vm960_vm12, %v957_v24, 0.0 }
 0x267   :  { %v962_v28 = vsel %vm960_vm12, %v955_v25, 0.0  ;;  %v976_v29 = vmul.f32 %v955_v25, %v955_v25  ;;  %v979_v32 = vsel %vm960_vm12, %v975_v23, 0.0  ;;  %v1178_v23 = vsub.s32 3, %v1828_v59 }
 0x268   :  { %v963_v30 = vadd.f32 %v962_v28, %v961_v27  ;;  %v984_v41 = vsel %vm960_vm12, %v978_v33, 0.0 }
 0x269   :  { %v980_v34 = vsel %vm960_vm12, %v976_v29, 0.0 }
 0x26a   :  { %v965_v35 = vadd.f32 %v964_v31, %v963_v30  ;;  %v981_v36 = vadd.f32 %v980_v34, %v979_v32 }
 0x26c   :  { %v967_v39 = vadd.f32 %v966_v38, %v965_v35  ;;  %v983_v40 = vadd.f32 %v982_v37, %v981_v36 }
 0x26e   :  { %v968_v42 = vrot.slane %v967_v39, 4  ;;  %v985_v43 = vadd.f32 %v984_v41, %v983_v40 }
 0x270   :  { %v969_v45 = vadd.f32 %v968_v42, %v967_v39  ;;  %v986_v46 = vrot.slane %v985_v43, 4 }
 0x272   :  { %v970_v47 = vrot.slane %v969_v45, 2  ;;  %v987_v48 = vadd.f32 %v986_v46, %v985_v43 }
 0x274   :  { %v971_v49 = vadd.f32 %v970_v47, %v969_v45  ;;  %v988_v50 = vrot.slane %v987_v48, 2 }
 0x276   :  { %v972_v51 = vrot.slane %v971_v49, 1  ;;  %v989_v52 = vadd.f32 %v988_v50, %v987_v48 }
 0x278   :  { %v973_v53 = vadd.f32 %v972_v51, %v971_v49  ;;  %v990_v54 = vrot.slane %v989_v52, 1 }
 0x27a   :  { %v974_v56 = vmul.f32 0.03125, %v973_v53  ;;  %v991_v57 = vadd.f32 %v990_v54, %v989_v52 }
 0x27c   :  { %v992_v60 = vmul.f32 0.03125, %v991_v57  ;;  %v993_v55 = vmul.f32 %v974_v56, %v974_v56 }
 0x27e   :  { %v994_v62 = vsub.f32 %v992_v60, %v993_v55 }
 0x280   :  { %v995_v63 = vmax.f32 %v994_v62, 0.0 }
 0x282   :  { %v996_v4 = vadd.f32 1e-05, %v995_v63 }
 0x284   :  { %1570 = vrsqrt.f32 %v996_v4 }
 0x28e   :  { %v1571_v1 = vpop.eup %1570 }
 0x28f   :  { %v998_v2 = vmul.f32 %v1571_v1, %v958_v0 }
 0x291   :  { %v999_v5 = vmul.f32 %v998_v2, %v974_v56  ;;  %v1011_v6 = vrot.slane %v998_v2, %v1834_v61 }
 0x293   :  { %v1000_v7 = vsub.f32 %v959_v3, %v999_v5  ;;  %v1013_v8 = vmul.f32 %v1011_v6, %v954_v21  ;;  %v1014_v9 = vmul.f32 %v1011_v6, %v955_v25  ;;  %v1015_v10 = vmul.f32 %v1011_v6, %v956_v44  ;;  %v1039_v21 = vld [vmem:[%s2122_s9] sm:$0x1f]  ;;  %s1597_s9 = smov [#allocation5]  }
 0x294   :  { %v1016_v11 = vmul.f32 %v1011_v6, %v957_v24  ;;  %v1072_v44 = vsub.s32 1, %v1828_v59  ;;  %v1231_v24 = vsub.s32 4, %v1828_v59  ;;  %v1976_v25 = vrot.slane %v1039_v21, %v1834_v61  ;;  %s1362_s19 = sshll.u32 %s1597_s9, 4  ;;  %s1363_s19 = int_to_ptr.vmem [resolvable:$true] %s1362_s19 }
 0x295   :  { %v1021_v12 = vrot.slane %v1000_v7, %v1834_v61  ;;  %v1982_v30 = vrot.slane %v1039_v21, %v1129_v22  ;;  %v1984_v31 = vrot.slane %v1039_v21, %v1178_v23  ;;  %s1572_s20 = scalar_lea.vmem %s1363_s19, 32  ;;  %p1577_p1 = scmp.lt.s32.totalorder %s1363_s19, %s1363_s19 }
 0x296   :  { %v1978_v26 = vrot.slane %v1039_v21, %v1072_v44  ;;  %v1989_v39 = vrot.slane %v1039_v21, %v1231_v24  ;;  %p1573_p0 = scmp.ne.s32.totalorder %s1363_s19, %s1572_s20  ;;  %p1578_p2 = scmp.lt.s32.totalorder %s1572_s20, %s1572_s20 }
 0x297   :  { %v1023_v13 = vadd.f32 %v1021_v12, %v1013_v8  ;;  %v1024_v14 = vadd.f32 %v1021_v12, %v1014_v9  ;;  %v1025_v15 = vadd.f32 %v1021_v12, %v1015_v10  ;;  %v1026_v18 = vadd.f32 %v1021_v12, %v1016_v11 }
 0x298   :  { %p1579_p3 = por %p1578_p2, %p1577_p1 }
 0x299   :  { %v1027_v19 = vpack.c.bf16 %v1024_v14, %v1023_v13  ;;  %v1028_v16 = vpack.c.bf16 %v1026_v18, %v1025_v15 }
 0x29a   :  { %p1580_p4 = pnand %p1579_p3, %p1573_p0 }
 0x29b   :  { %v1031_v17 = vrot.slane %v1027_v19, 4  ;;  %v1032_v20 = vrot.slane %v1028_v16, 4 }
 0x29d   :  { %1035 = vst.msk [vmem:[#allocation3] sm:$0xf0] %vm1004_vm11, %v1031_v17  ;;  %1037 = vst.msk [vmem:[#allocation3 + $0x10] sm:$0xf0] %vm1004_vm11, %v1032_v20 }
 0x29e   :  { %1036 = vst.msk [vmem:[#allocation3 + $0x8] sm:$0xf] %vm1001_vm10, %v1031_v17  ;;  %1038 = vst.msk [vmem:[#allocation3 + $0x18] sm:$0xf] %vm1001_vm10, %v1032_v20 }
 0x2a4   :  { %v1042_v27 = vld [vmem:[#allocation3 + $0x10] sm:$0xf8]  ;;  %v1998_v46 = vld [vmem:[#allocation3] sm:$0xf8] }
 0x2a5   :  { %v1980_v28 = vld [vmem:[#allocation3 + $0x18] sm:$0xf]  ;;  %v1110_v29 = vld [vmem:[#allocation3 + $0x10] sm:$0xf0]  ;;  %v1047_v32 = vunpack.c.l.bf16 %v1042_v27  ;;  %v1048_v33 = vunpack.c.h.bf16 %v1042_v27  ;;  %v1109_v51 = vld [vmem:[#allocation3] sm:$0xf0]  ;;  %v1044_v62 = vunpack.c.l.bf16 %v1998_v46  ;;  %v1045_v1 = vunpack.c.h.bf16 %v1998_v46 }
 0x2a6   :  { %v1118_v34 = vrot.slane %v1110_v29, 4  ;;  %v1119_v35 = vrot.slane %v1980_v28, 4  ;;  %v1159_v36 = vld [vmem:[#allocation3 + $0x18] sm:$0x1f]  ;;  %v1216_v37 = vld [vmem:[#allocation3 + $0x10] sm:$0xe0]  ;;  %v1069_v40 = vunpack.c.l.bf16 %v1980_v28 }
 0x2a7   :  { %v1987_v61 = vrot.slane %v1159_v36, 4  ;;  %v1221_v38 = vrot.slane %v1216_v37, 4  ;;  %v1057_v41 = vmul.f32 %v1976_v25, %v1047_v32  ;;  %v1077_v42 = vmul.f32 %v1978_v26, %v1047_v32  ;;  %v2007_v63 = vld [vmem:[#allocation3 + $0x8] sm:$0xf]  ;;  %v1215_v5 = vld [vmem:[#allocation3] sm:$0xe0] }
 0x2a8   :  { %v1995_v43 = vmul.f32 %v1978_v26, %v1048_v33  ;;  %v1120_v45 = vsel %vm709_vm6, %v1118_v34, %v1119_v35  ;;  %v1115_v2 = vrot.slane %v1109_v51, 4  ;;  %v1158_v3 = vld [vmem:[#allocation3 + $0x8] sm:$0x1f]  ;;  %v1054_v9 = vmul.f32 %v1976_v25, %v1044_v62 }
 0x2a9   :  { %v1125_v47 = vunpack.c.l.bf16 %v1120_v45  ;;  %v1126_v48 = vunpack.c.h.bf16 %v1120_v45  ;;  %v1165_v49 = vsel %vm709_vm6, %v1118_v34, %v1987_v61  ;;  %v1222_v50 = vsel %vm709_vm6, %v1221_v38, %v1987_v61  ;;  %v1041_v45 = vld [vmem:[#allocation3 + $0x8] sm:$0x7] }
 0x2aa   :  { %v1092_v52 = vrot.slane %v1077_v42, 1  ;;  %v1093_v53 = vrot.slane %v1995_v43, 1  ;;  %v1173_v54 = vunpack.c.l.bf16 %v1165_v49  ;;  %v1174_v56 = vunpack.c.h.bf16 %v1165_v49 }
 0x2ab   :  { %v1133_v57 = vmul.f32 %v1982_v30, %v1125_v47  ;;  %v1227_v60 = vunpack.c.l.bf16 %v1222_v50  ;;  %v1228_v55 = vunpack.c.h.bf16 %v1222_v50  ;;  %v1074_v11 = vmul.f32 %v1978_v26, %v1044_v62 }
 0x2ac   :  { %v1094_v4 = vsel %vm1086_vm13, %v1092_v52, %v1093_v53  ;;  %v1183_v0 = vmul.f32 %v1984_v31, %v1173_v54  ;;  %v2020_v12 = vmul.f32 %v1978_v26, %v1045_v1  ;;  %v1116_v13 = vrot.slane %v2007_v63, 4 }
 0x2ad   :  { %v1106_v6 = vadd.f32 %v1094_v4, %v1057_v41  ;;  %v1143_v7 = vrot.slane %v1133_v57, 2  ;;  %v1236_v8 = vmul.f32 %v1989_v39, %v1227_v60  ;;  %v1162_v18 = vrot.slane %v1158_v3, 4 }
 0x2ae   :  { %v1198_v10 = vrot.slane %v1183_v0, 3  ;;  %v1219_v19 = vrot.slane %v1215_v5, 4  ;;  %v1087_v16 = vrot.slane %v1074_v11, 1  ;;  %v1088_v17 = vrot.slane %v2020_v12, 1 }
 0x2af   :  { %v1155_v14 = vadd.f32 %v1143_v7, %v1106_v6  ;;  %v1251_v15 = vrot.slane %v1236_v8, 4  ;;  %v1117_v20 = vsel %vm709_vm6, %v1115_v2, %v1116_v13  ;;  %v1058_v44 = vmul.f32 %v1976_v25, %v1048_v33 }
 0x2b0   :  { %v1123_v22 = vunpack.c.l.bf16 %v1117_v20  ;;  %v1163_v23 = vsel %vm709_vm6, %v1115_v2, %v1162_v18  ;;  %v1220_v24 = vsel %vm709_vm6, %v1219_v19, %v1162_v18  ;;  %v1089_v27 = vsel %vm1086_vm13, %v1087_v16, %v1088_v17  ;;  %v1043_v19 = vld [vmem:[#allocation3 + $0x18] sm:$0x7] }
 0x2b1   :  { %v1212_v21 = vadd.f32 %v1198_v10, %v1155_v14  ;;  %v1170_v28 = vunpack.c.l.bf16 %v1163_v23  ;;  %v1171_v29 = vunpack.c.h.bf16 %v1163_v23  ;;  %v1225_v32 = vunpack.c.l.bf16 %v1220_v24 }
 0x2b2   :  { %v1103_v35 = vadd.f32 %v1089_v27, %v1054_v9  ;;  %v2032_v36 = vmul.f32 %v1982_v30, %v1123_v22  ;;  %v1226_v37 = vunpack.c.h.bf16 %v1220_v24  ;;  %v1079_v41 = vmul.f32 %v1978_v26, %v1069_v40 }
 0x2b3   :  { %v1265_v34 = vadd.f32 %v1251_v15, %v1212_v21  ;;  %v2035_v33 = vmul.f32 %v1984_v31, %v1170_v28  ;;  %v2038_v38 = vmul.f32 %v1989_v39, %v1225_v32  ;;  %v2042_v42 = vmul.f32 %v1982_v30, %v1126_v48 }
 0x2b4   :  { %v1140_v49 = vrot.slane %v2032_v36, 2  ;;  %v2047_v50 = vmul.f32 %v1984_v31, %v1174_v56  ;;  %v2050_v51 = vmul.f32 %v1989_v39, %v1228_v55  ;;  %v1095_v40 = vrot.slane %v1079_v41, 1 }
 0x2b5   :  { %v1279_v47 = vsel %vm1268_vm14, %v1265_v34, 0.0  ;;  %v1193_v52 = vrot.slane %v2035_v33, 3  ;;  %v1246_v54 = vrot.slane %v2038_v38, 4  ;;  %v1144_v48 = vrot.slane %v2042_v42, 2 }
 0x2b6   :  { %1280 = vadd.xlane.f32.xlu1 %v1279_v47  ;;  %v1152_v57 = vadd.f32 %v1140_v49, %v1103_v35  ;;  %v1199_v60 = vrot.slane %v2047_v50, 3  ;;  %v1252_v62 = vrot.slane %v2050_v51, 4  ;;  %v1046_v4 = vunpack.c.l.bf16 %v1041_v45 }
 0x2b7   :  { %v1096_v56 = vsel %vm1086_vm13, %v1093_v53, %v1095_v40  ;;  %v1145_v55 = vsel %vm1139_vm15, %v1143_v7, %v1144_v48  ;;  %v1068_v0 = vunpack.c.l.bf16 %v2007_v63  ;;  %v1124_v2 = vunpack.c.h.bf16 %v1117_v20 }
 0x2b8   :  { %v1209_v3 = vadd.f32 %v1193_v52, %v1152_v57  ;;  %v1107_v5 = vadd.f32 %v1096_v56, %v1058_v44  ;;  %v1200_v6 = vsel %vm549_vm5, %v1198_v10, %v1199_v60  ;;  %v1253_v8 = vsel %vm709_vm6, %v1251_v15, %v1252_v62 }
 0x2b9   :  { %v1056_v9 = vmul.f32 %v1976_v25, %v1046_v4  ;;  %v1076_v11 = vmul.f32 %v1978_v26, %v1068_v0  ;;  %v1132_v13 = vmul.f32 %v1982_v30, %v1124_v2  ;;  %v1172_v43 = vunpack.c.l.bf16 %v1162_v18 }
 0x2ba   :  { %v1262_v53 = vadd.f32 %v1246_v54, %v1209_v3  ;;  %v1156_v7 = vadd.f32 %v1145_v55, %v1107_v5  ;;  %v1181_v63 = vmul.f32 %v1984_v31, %v1171_v29  ;;  %v1234_v14 = vmul.f32 %v1989_v39, %v1226_v37 }
 0x2bb   :  { %v1090_v16 = vrot.slane %v1076_v11, 1  ;;  %v1141_v10 = vrot.slane %v1132_v13, 2  ;;  %v1182_v15 = vmul.f32 %v1984_v31, %v1172_v43  ;;  %v1235_v20 = vmul.f32 %v1989_v39, %v1172_v43 }
 0x2bc   :  { %v1269_v26 = vsel %vm1268_vm14, %v1262_v53, 0.0  ;;  %v1213_v44 = vadd.f32 %v1200_v6, %v1156_v7  ;;  %v1194_v30 = vrot.slane %v1181_v63, 3  ;;  %v1247_v18 = vrot.slane %v1234_v14, 4 }
 0x2bd   :  { %1270 = vadd.xlane.f32.xlu0 %v1269_v26  ;;  %v1105_v21 = vadd.f32 %v1090_v16, %v1056_v9  ;;  %v1196_v22 = vrot.slane %v1182_v15, 3  ;;  %v1249_v23 = vrot.slane %v1235_v20, 4  ;;  %v1049_v24 = vunpack.c.l.bf16 %v1043_v19 }
 0x2be   :  { %v1266_v27 = vadd.f32 %v1253_v8, %v1213_v44  ;;  %v1175_v28 = vunpack.c.l.bf16 %v1987_v61  ;;  %v1055_v29 = vmul.f32 %v1976_v25, %v1045_v1  ;;  %v1091_v32 = vsel %vm1086_vm13, %v1088_v17, %v1090_v16 }
 0x2bf   :  { %v1154_v34 = vadd.f32 %v1141_v10, %v1105_v21  ;;  %v1197_v35 = vsel %vm549_vm5, %v1194_v30, %v1196_v22  ;;  %v1059_v36 = vmul.f32 %v1976_v25, %v1049_v24  ;;  %v1142_v12 = vsel %vm1139_vm15, %v1140_v49, %v1141_v10 }
 0x2c0   :  { %v1282_v37 = vsel %vm960_vm12, %v1266_v27, 0.0  ;;  %v1185_v33 = vmul.f32 %v1984_v31, %v1175_v28  ;;  %v1238_v41 = vmul.f32 %v1989_v39, %v1175_v28  ;;  %v1104_v61 = vadd.f32 %v1091_v32, %v1055_v29 }
 0x2c1   :  { %1283 = vadd.xlane.f32.xlu1 %v1282_v37  ;;  %v1211_v46 = vadd.f32 %v1197_v35, %v1154_v34  ;;  %v1108_v1 = vadd.f32 %v1095_v40, %v1059_v36  ;;  %v1250_v17 = vsel %vm709_vm6, %v1247_v18, %v1249_v23  ;;  %v1195_v51 = vsel %vm549_vm5, %v1193_v52, %v1194_v30  ;;  %v1392_v52 = vld [vmem:[#allocation4] ss:$0 sm:$0xff] }
 0x2c2   :  { %v1201_v42 = vrot.slane %v1185_v33, 3  ;;  %v1254_v45 = vrot.slane %v1238_v41, 4  ;;  %v1153_v47 = vadd.f32 %v1142_v12, %v1104_v61  ;;  %v1248_v40 = vsel %vm709_vm6, %v1246_v54, %v1247_v18 }
 0x2c3   :  { %v1264_v50 = vadd.f32 %v1250_v17, %v1211_v46  ;;  %v1157_v25 = vadd.f32 %v1144_v48, %v1108_v1  ;;  %v1317_v38 = vand.u32 127, %v450_v58 }
 0x2c4   :  { %v1202_v31 = vsel %vm549_vm5, %v1199_v60, %v1201_v42  ;;  %v1210_v57 = vadd.f32 %v1195_v51, %v1153_v47  ;;  %v1255_v49 = vsel %vm709_vm6, %v1252_v62, %v1254_v45 }
 0x2c5   :  { %v1276_v39 = vsel %vm1275_vm0, %v1264_v50, 0.0  ;;  %v1214_v4 = vadd.f32 %v1202_v31, %v1157_v25  ;;  %v1318_v6 = vadd.s32 6, %v1317_v38  ;;  %v1323_v8 = vadd.s32 4294967294, %v1317_v38 }
 0x2c6   :  { %1277 = vadd.xlane.f32.xlu0 %v1276_v39  ;;  %v1263_v56 = vadd.f32 %v1248_v40, %v1210_v57  ;;  %v1330_v62 = vadd.s32 4294967286, %v1317_v38 }
 0x2c7   :  { %v1267_v55 = vadd.f32 %v1255_v49, %v1214_v4  ;;  %v1321_v9 = vsub.s32 %v1318_v6, %v1828_v59  ;;  %v1326_v11 = vsub.s32 %v1323_v8, %v1828_v59 }
 0x2c8   :  { %v1272_v48 = vsel %vm960_vm12, %v1263_v56, 0.0  ;;  %v1333_v43 = vsub.s32 %v1330_v62, %v1828_v59 }
 0x2c9   :  { %v1285_v0 = vsel %vm1275_vm0, %v1267_v55, 0.0 }
 0x2ca   :  { %1286 = vadd.xlane.f32.xlu1 %v1285_v0  ;;  %1273 = vadd.xlane.f32.xlu0 %v1272_v48 }
 0x2e0   :  { %1295 = vperm.xlu0 %1567, %v1392_v52  }
 0x343   :  { %v1281_v2 = vpop.xlane.xlu1 %1280 }
 0x34a   :  { %v1271_v60 = vpop.xlane.xlu0 %1270 }
 0x34e   :  { %v1284_v5 = vpop.xlane.xlu1 %1283 }
 0x353   :  { %v1278_v3 = vpop.xlane.xlu0 %1277 }
 0x357   :  { %v1274_v54 = vpop.xlane.xlu0 %1273  ;;  %v1287_v53 = vpop.xlane.xlu1 %1286 }
 0x35f   :  { %v1296_v13 = vpop.permute.xlu0 %1295 }
 0x360   :  { %v1298_v7 = vadd.f32 %v1296_v13, %v1271_v60  ;;  %v1299_v63 = vadd.f32 %v1296_v13, %v1274_v54  ;;  %v1300_v14 = vadd.f32 %v1296_v13, %v1278_v3  ;;  %v1301_v19 = vadd.f32 %v1296_v13, %v1281_v2 }
 0x361   :  { %v1302_v16 = vadd.f32 %v1296_v13, %v1284_v5  ;;  %v1303_v10 = vadd.f32 %v1296_v13, %v1287_v53 }
 0x362   :  { %v1304_v58 = vmax.f32 %v1298_v7, 0.0  ;;  %v1305_v15 = vmax.f32 %v1299_v63, 0.0  ;;  %v1306_v20 = vmax.f32 %v1300_v14, 0.0  ;;  %v1307_v26 = vmax.f32 %v1301_v19, 0.0 }
 0x363   :  { %v1308_v44 = vmax.f32 %v1302_v16, 0.0  ;;  %v1309_v30 = vmax.f32 %v1303_v10, 0.0 }
 0x364   :  { %v1322_v18 = vrot.slane %v1304_v58, %v1321_v9  ;;  %v1327_v21 = vrot.slane %v1305_v15, %v1326_v11  ;;  %v1340_v22 = vrot.slane %v1307_v26, %v1321_v9  ;;  %v1334_v23 = vrot.slane %v1306_v20, %v1333_v43 }
 0x365   :  { %v1344_v59 = vrot.slane %v1308_v44, %v1326_v11  ;;  %v1349_v24 = vrot.slane %v1309_v30, %v1333_v43 }
 0x366   :  { %v1329_v27 = vsel %vm1328_vm1, %v1327_v21, %v1322_v18 }
 0x367   :  { %v1336_v28 = vsel %vm1335_vm2, %v1334_v23, %v1329_v27  ;;  %v1345_v29 = vsel %vm1328_vm1, %v1344_v59, %v1340_v22 }
 0x368   :  { %v1350_v32 = vsel %vm1335_vm2, %v1349_v24, %v1345_v29 }
 0x369   :  { %v1352_v34 = vsel %vm1351_vm3, %v1350_v32, %v1336_v28 }
 0x36a   :  { %1355 = vst.msk [vmem:[#allocation5 - $0x6] sm:$0xc0] %vm1354_vm4, %v1352_v34 }
 0x36b   :  { %1583 = shalt.err (!%p1580_p4)
}
 0x36c   :  { %s1584_s21 = scalar_lea.hbm %s2124_s11, 32 }
 0x36d   :  { %p1585_p5 = scmp.ne.s32.totalorder %s2124_s11, %s1584_s21  ;;  %p1588_p6 = scmp.lt.u32.totalorder %s1584_s21, %s2124_s11 }
 0x36f   :  { %p1590_p7 = pnand %p1588_p6, %p1585_p5 }
 0x371   :  { %1593 = shalt.err (!%p1590_p7)
}
 0x372   :  { %1365 = dma.vmem_to_hbm [thread:$0]  %s1363_s19, 32, %s2124_s11, [#allocation6]  }
 0x373   :  { %1594 = dma.done.wait [#allocation6], 32  }
 0x374   :  { %1595 = vsyncadd [#allocation6], 4294967264 }
 0x375   :  { %1369 = vsyncpa [#allocation6], 1 }

</bundles_post_ra>
